<compile_context>
chip_gen: v5e
topology: v5e:2x2
jax: 0.10.0
libtpu: 0.0.40
codegen_flags: <defaults>
</compile_context>

<pallas_src>
import functools

import jax
import jax.numpy as jnp
from jax.experimental import pallas as pl
from jax.experimental.pallas import tpu as pltpu


# ----------------------------------------------------------------------------
# Kernel 1: fused modality encoders + shared projector
# ----------------------------------------------------------------------------
def _encode_project_kernel(sp_ref, lc_ref, spw_ref, spb_ref, lcw_ref, lcb_ref,
                           w1_ref, b1_ref, g_ref, beta_ref, w2_ref, b2_ref,
                           o_ref):
    # Frozen query encoders (stand-ins for the externally supplied encoders).
    sf = jnp.dot(sp_ref[...], spw_ref[...],
                 preferred_element_type=jnp.float32) + spb_ref[...]
    lf = jnp.dot(lc_ref[...], lcw_ref[...],
                 preferred_element_type=jnp.float32) + lcb_ref[...]

    # Stack both modalities -> one (2N, FEAT) block for better MXU row fill.
    feat = jnp.concatenate([sf, lf], axis=0)

    # TODO(synk): the reference `Transformer(projection_args)` shared encoder
    # is not defined in the source file; substituted with a fused
    # Linear -> LayerNorm -> ReLU -> Linear projector (same role: feat -> q).
    h = jnp.dot(feat, w1_ref[...],
                preferred_element_type=jnp.float32) + b1_ref[...]
    mu = jnp.mean(h, axis=-1, keepdims=True)
    var = jnp.mean(jnp.square(h - mu), axis=-1, keepdims=True)
    h = (h - mu) * jax.lax.rsqrt(var + 1e-5) * g_ref[...] + beta_ref[...]
    h = jnp.maximum(h, 0.0)
    o_ref[...] = jnp.dot(h, w2_ref[...],
                         preferred_element_type=jnp.float32) + b2_ref[...]


def encode_project(spectra, lightcurves, p):
    n = spectra.shape[0]
    proj_dim = p["w2"].shape[1]
    args = (spectra, lightcurves, p["sp_w"], p["sp_b"], p["lc_w"], p["lc_b"],
            p["w1"], p["b1"], p["gamma"], p["beta"], p["w2"], p["b2"])
    vmem = pl.BlockSpec(memory_space=pltpu.MemorySpace.VMEM)
    # Rows [0:n]  -> spectra projection   (q_s == k_s, deepcopied weights)
    # Rows [n:2n] -> lightcurve projection (q_l == k_l)
    return pl.pallas_call(
        _encode_project_kernel,
        out_shape=jax.ShapeDtypeStruct((2 * n, proj_dim), jnp.float32),
        in_specs=[vmem] * len(args),
        out_specs=vmem,
    )(*args)


# ----------------------------------------------------------------------------
# Kernel 2: fused bidirectional contrastive loss, streamed over the queue (K)
# ----------------------------------------------------------------------------
def _contrastive_kernel(q_ref, k_ref, queue_ref, neg_ref, stats_ref,
                        qn_sc, zp_sc, m_sc, s_sc, *, inv_t):
    j = pl.program_id(0)
    nj = pl.num_programs(0)

    # Normalization + positive logit only once; cached in VMEM scratch so the
    # steady-state tile is pure DMA + matmul + online-LSE.
    @pl.when(j == 0)
    def _():
        q = q_ref[...]                                          # (2, N, C)
        k = k_ref[...]                                          # (2, N, C)
        # F.normalize(x, dim=1): x / max(||x||_2, 1e-12)
        qn = q * jax.lax.rsqrt(
            jnp.maximum(jnp.sum(q * q, -1, keepdims=True), 1e-24))
        kn = k * jax.lax.rsqrt(
            jnp.maximum(jnp.sum(k * k, -1, keepdims=True), 1e-24))
        zp = inv_t * jnp.sum(qn * kn, axis=-1, keepdims=True)   # (2, N, 1)
        qn_sc[...] = qn
        zp_sc[...] = zp
        m_sc[...] = zp                 # positive logit seeds the running max
        s_sc[...] = jnp.ones_like(s_sc)

    # Batched negative logits for both directions on this queue tile.
    zn = inv_t * jnp.einsum('dnc,dck->dnk', qn_sc[...], queue_ref[...],
                            preferred_element_type=jnp.float32)  # (2, N, TK)
    # The module returns logits_s + logits_l; emit the summed negatives
    # directly (single lane-dense (N, K) HBM write).
    neg_ref[...] = zn[0] + zn[1]

    # Per-direction online logsumexp across the K tiles.
    m_prev = m_sc[...]
    m_new = jnp.maximum(m_prev, jnp.max(zn, axis=-1, keepdims=True))
    s_sc[...] = (s_sc[...] * jnp.exp(m_prev - m_new)
                 + jnp.sum(jnp.exp(zn - m_new), axis=-1, keepdims=True))
    m_sc[...] = m_new

    @pl.when(j == nj - 1)
    def _():
        lse = m_sc[...] + jnp.log(s_sc[...])                    # (2, N, 1)
        col = jax.lax.broadcasted_iota(jnp.int32, stats_ref.shape, 2)
        # lane-dense stats block: col 0 = l_pos/T, col 1 = logsumexp
        stats_ref[...] = jnp.where(col == 0, zp_sc[...],
                                   jnp.where(col == 1, lse, 0.0))


def contrastive_pair(q2, k2, queues, temperature, block_k):
    d, n, c = q2.shape
    k_total = queues.shape[2]
    tk = min(block_k, k_total)
    assert k_total % tk == 0, "queue size must be a multiple of the K tile"
    kern = functools.partial(_contrastive_kernel, inv_t=float(1.0 / temperature))
    neg_sum, stats = pl.pallas_call(
        kern,
        out_shape=(
            jax.ShapeDtypeStruct((n, k_total), jnp.float32),   # (l_neg_s+l_neg_l)/T
            jax.ShapeDtypeStruct((d, n, 128), jnp.float32),    # [zp, lse, 0...]
        ),
        grid=(k_total // tk,),
        in_specs=[
            pl.BlockSpec((d, n, c), lambda j: (0, 0, 0)),
            pl.BlockSpec((d, n, c), lambda j: (0, 0, 0)),
            pl.BlockSpec((d, c, tk), lambda j: (0, 0, j)),
        ],
        out_specs=(
            pl.BlockSpec((n, tk), lambda j: (0, j)),
            pl.BlockSpec((d, n, 128), lambda j: (0, 0, 0)),
        ),
        scratch_shapes=[
            pltpu.VMEM((d, n, c), jnp.float32),   # normalized q (both dirs)
            pltpu.VMEM((d, n, 1), jnp.float32),   # l_pos / T
            pltpu.VMEM((d, n, 1), jnp.float32),   # running max
            pltpu.VMEM((d, n, 1), jnp.float32),   # running sum of exp
        ],
        compiler_params=pltpu.CompilerParams(
            dimension_semantics=("arbitrary",)),  # K axis carries LSE state
    )(q2, k2, queues)
    return neg_sum, stats


# ----------------------------------------------------------------------------
# Plain-JAX glue (queue bookkeeping, forward orchestration)
# ----------------------------------------------------------------------------
def _enqueue(queues, ptrs, keys, k_total):
    # queues: (2, C, K); ptrs: (2,) int32; keys: (2, B, C)
    # Matches the PyTorch _dequeue_and_enqueue including the wrap-around
    # branch (modular column indices).  In-place thanks to state donation.
    b = keys.shape[1]
    cols = (ptrs[:, None] + jnp.arange(b, dtype=ptrs.dtype)[None, :]) % k_total
    for i in range(2):
        qd = queues[i]
        qd = qd.at[:, cols[i]].set(keys[i].T)
        queues = queues.at[i].set(qd)
    new_ptrs = (ptrs + b) % k_total
    return queues, new_ptrs


@functools.partial(jax.jit,
                   static_argnames=("k_total", "temperature", "block_k"),
                   donate_argnums=(1,))
def multimodal_moco_forward(params, state, lightcurves, spectra, *,
                            k_total, temperature, block_k=2048):
    n = spectra.shape[0]

    # Fused: encoders + shared projector (q and k heads share deepcopied weights).
    proj = encode_project(spectra, lightcurves, params)        # (2N, PROJ)
    proj_s, proj_l = proj[:n], proj[n:]
    q_s, q_l = proj_s, proj_l
    k_s = jax.lax.stop_gradient(proj_s)                        # no-grad key path
    k_l = jax.lax.stop_gradient(proj_l)

    # Direction 0: (q_s, k_l, lightcurve_queue)   -> loss_s
    # Direction 1: (q_l, k_s, spectra_queue)      -> loss_l
    q_stack = jnp.stack([q_s, q_l], axis=0)                    # (2, N, C)
    k_stack = jnp.stack([k_l, k_s], axis=0)                    # (2, N, C)
    neg_sum, stats = contrastive_pair(q_stack, k_stack, state["queues"],
                                      temperature, block_k)
    zp = stats[:, :, 0]                                        # (2, N)  l_pos / T
    lse = stats[:, :, 1]                                       # (2, N)
    per_row = lse - zp                                         # CE with label 0
    loss_s = jnp.mean(per_row[0])
    loss_l = jnp.mean(per_row[1])
    loss = (loss_s + loss_l) / 2.0

    # logits = logits_s + logits_l : col 0 = zp_s + zp_l, cols 1.. = summed negs
    logits = jnp.concatenate([(zp[0] + zp[1])[:, None], neg_sum], axis=1)
    labels = jnp.zeros((n,), dtype=jnp.int32)

    # Enqueue raw (unnormalized) keys, matching the reference:
    # lightcurve_queue <- k_l, spectra_queue <- k_s.
    keys = jnp.stack([k_l, k_s], axis=0)
    new_queues, new_ptrs = _enqueue(state["queues"], state["queue_ptrs"],
                                    keys, k_total)

    out = {
        "loss": loss,
        "logits": logits,
        "loss_s": loss_s,
        "loss_l": loss_l,
        "labels": labels,
        "q": q_l + q_s,
        "k": k_l + k_s,
    }
    new_state = {"queues": new_queues, "queue_ptrs": new_ptrs}
    return out, new_state


# ----------------------------------------------------------------------------
# Main
# ----------------------------------------------------------------------------
if __name__ == "__main__":
    N = 8            # batch
    L_SP = 256       # spectra length
    L_LC = 128       # lightcurve length
    FEAT = 128       # encoder output feature dim
    HID = 128        # projector hidden dim (scaled down from 512)
    PROJ = 128       # projection_dim
    K_QUEUE = 512    # queue size (scaled down from 65536)
    BLOCK_K = 256    # queue tile (use 2048-8192 at real K)
    T = 0.07

    key = jax.random.PRNGKey(0)
    ks = jax.random.split(key, 8)

    lightcurves = jax.random.normal(ks[0], (N, L_LC), jnp.float32)
    spectra = jax.random.normal(ks[1], (N, L_SP), jnp.float32)

    def lin_init(k, din, dout):
        return (0.02 * jax.random.normal(k, (din, dout), jnp.float32),
                jnp.zeros((1, dout), jnp.float32))

    sp_w, sp_b = lin_init(ks[2], L_SP, FEAT)
    lc_w, lc_b = lin_init(ks[3], L_LC, FEAT)
    w1, b1 = lin_init(ks[4], FEAT, HID)
    w2, b2 = lin_init(ks[5], HID, PROJ)

    # shared_encoder_k = copy.deepcopy(shared_encoder_q) -> identical weights,
    # so one parameter set serves both q and k projection paths.
    params = dict(sp_w=sp_w, sp_b=sp_b, lc_w=lc_w, lc_b=lc_b,
                  w1=w1, b1=b1,
                  gamma=jnp.ones((1, HID), jnp.float32),
                  beta=jnp.zeros((1, HID), jnp.float32),
                  w2=w2, b2=b2)

    lq = jax.random.normal(ks[6], (PROJ, K_QUEUE), jnp.float32)
    lq = lq / jnp.maximum(jnp.linalg.norm(lq, axis=0, keepdims=True), 1e-12)
    sq = jax.random.normal(ks[7], (PROJ, K_QUEUE), jnp.float32)
    sq = sq / jnp.maximum(jnp.linalg.norm(sq, axis=0, keepdims=True), 1e-12)

    state = dict(
        queues=jnp.stack([lq, sq], axis=0),        # [0]=lightcurve_q, [1]=spectra_q
        queue_ptrs=jnp.zeros((2,), jnp.int32),
    )

    out, new_state = multimodal_moco_forward(
        params, state, lightcurves, spectra,
        k_total=K_QUEUE, temperature=T, block_k=BLOCK_K)

    jax.block_until_ready(out["loss"])
    jax.block_until_ready(out["logits"])
    jax.block_until_ready(new_state["queues"])
    print("KERNEL_OK")
</pallas_src>

<mosaic_0001>
module attributes {stable_mosaic.version = 11 : i64} {
  func.func @_encode_project_kernel(%arg0: memref<8x256xf32, #tpu.memory_space<vmem>>, %arg1: memref<8x128xf32, #tpu.memory_space<vmem>>, %arg2: memref<256x128xf32, #tpu.memory_space<vmem>>, %arg3: memref<1x128xf32, #tpu.memory_space<vmem>>, %arg4: memref<128x128xf32, #tpu.memory_space<vmem>>, %arg5: memref<1x128xf32, #tpu.memory_space<vmem>>, %arg6: memref<128x128xf32, #tpu.memory_space<vmem>>, %arg7: memref<1x128xf32, #tpu.memory_space<vmem>>, %arg8: memref<1x128xf32, #tpu.memory_space<vmem>>, %arg9: memref<1x128xf32, #tpu.memory_space<vmem>>, %arg10: memref<128x128xf32, #tpu.memory_space<vmem>>, %arg11: memref<1x128xf32, #tpu.memory_space<vmem>>, %arg12: memref<16x128xf32, #tpu.memory_space<vmem>>) attributes {dimension_semantics = [], scalar_prefetch = 0 : i64, scratch_operands = 0 : i64, tpu.core_type = #tpu.core_type<tc>} {
    %c0 = arith.constant 0 : index
    %c0_0 = arith.constant 0 : index
    %0 = vector.load %arg0[%c0, %c0_0] : memref<8x256xf32, #tpu.memory_space<vmem>>, vector<8x256xf32>
    %c0_1 = arith.constant 0 : index
    %c0_2 = arith.constant 0 : index
    %1 = vector.load %arg2[%c0_1, %c0_2] : memref<256x128xf32, #tpu.memory_space<vmem>>, vector<256x128xf32>
    %cst = arith.constant dense<0.000000e+00> : vector<8x128xf32>
    %2 = tpu.matmul %0, %1, %cst {dimension_numbers = #tpu.dot_dimension_numbers<[1], [0], [0], [1], [0, 0, 1, 1], [], []>} : vector<8x256xf32>, vector<256x128xf32>, vector<8x128xf32> -> vector<8x128xf32>
    %c0_3 = arith.constant 0 : index
    %c0_4 = arith.constant 0 : index
    %3 = vector.load %arg3[%c0_3, %c0_4] : memref<1x128xf32, #tpu.memory_space<vmem>>, vector<1x128xf32>
    %4 = vector.broadcast %3 : vector<1x128xf32> to vector<8x128xf32>
    %5 = arith.addf %2, %4 : vector<8x128xf32>
    %c0_5 = arith.constant 0 : index
    %c0_6 = arith.constant 0 : index
    %6 = vector.load %arg1[%c0_5, %c0_6] : memref<8x128xf32, #tpu.memory_space<vmem>>, vector<8x128xf32>
    %c0_7 = arith.constant 0 : index
    %c0_8 = arith.constant 0 : index
    %7 = vector.load %arg4[%c0_7, %c0_8] : memref<128x128xf32, #tpu.memory_space<vmem>>, vector<128x128xf32>
    %cst_9 = arith.constant dense<0.000000e+00> : vector<8x128xf32>
    %8 = tpu.matmul %6, %7, %cst_9 {dimension_numbers = #tpu.dot_dimension_numbers<[1], [0], [0], [1], [0, 0, 1, 1], [], []>} : vector<8x128xf32>, vector<128x128xf32>, vector<8x128xf32> -> vector<8x128xf32>
    %c0_10 = arith.constant 0 : index
    %c0_11 = arith.constant 0 : index
    %9 = vector.load %arg5[%c0_10, %c0_11] : memref<1x128xf32, #tpu.memory_space<vmem>>, vector<1x128xf32>
    %10 = vector.broadcast %9 : vector<1x128xf32> to vector<8x128xf32>
    %11 = arith.addf %8, %10 : vector<8x128xf32>
    %12 = tpu.concatenate %5, %11 in 0 : vector<8x128xf32>, vector<8x128xf32> -> vector<16x128xf32>
    %c0_12 = arith.constant 0 : index
    %c0_13 = arith.constant 0 : index
    %13 = vector.load %arg6[%c0_12, %c0_13] : memref<128x128xf32, #tpu.memory_space<vmem>>, vector<128x128xf32>
    %cst_14 = arith.constant dense<0.000000e+00> : vector<16x128xf32>
    %14 = tpu.matmul %12, %13, %cst_14 {dimension_numbers = #tpu.dot_dimension_numbers<[1], [0], [0], [1], [0, 0, 1, 1], [], []>} : vector<16x128xf32>, vector<128x128xf32>, vector<16x128xf32> -> vector<16x128xf32>
    %c0_15 = arith.constant 0 : index
    %c0_16 = arith.constant 0 : index
    %15 = vector.load %arg7[%c0_15, %c0_16] : memref<1x128xf32, #tpu.memory_space<vmem>>, vector<1x128xf32>
    %16 = vector.broadcast %15 : vector<1x128xf32> to vector<16x128xf32>
    %17 = arith.addf %14, %16 : vector<16x128xf32>
    %cst_17 = arith.constant dense<0.000000e+00> : vector<16xf32>
    %18 = vector.multi_reduction <add>, %17, %cst_17 [1] : vector<16x128xf32> to vector<16xf32>
    %19 = vector.shape_cast %18 : vector<16xf32> to vector<16x1xf32>
    %cst_18 = arith.constant 1.280000e+02 : f32
    %20 = vector.broadcast %cst_18 : f32 to vector<16x1xf32>
    %21 = arith.divf %19, %20 : vector<16x1xf32>
    %22 = vector.broadcast %21 : vector<16x1xf32> to vector<16x128xf32>
    %23 = arith.subf %17, %22 : vector<16x128xf32>
    %24 = arith.mulf %23, %23 : vector<16x128xf32>
    %cst_19 = arith.constant dense<0.000000e+00> : vector<16xf32>
    %25 = vector.multi_reduction <add>, %24, %cst_19 [1] : vector<16x128xf32> to vector<16xf32>
    %26 = vector.shape_cast %25 : vector<16xf32> to vector<16x1xf32>
    %cst_20 = arith.constant 1.280000e+02 : f32
    %27 = vector.broadcast %cst_20 : f32 to vector<16x1xf32>
    %28 = arith.divf %26, %27 : vector<16x1xf32>
    %29 = vector.broadcast %21 : vector<16x1xf32> to vector<16x128xf32>
    %30 = arith.subf %17, %29 : vector<16x128xf32>
    %cst_21 = arith.constant 9.99999974E-6 : f32
    %31 = vector.broadcast %cst_21 : f32 to vector<16x1xf32>
    %32 = arith.addf %28, %31 : vector<16x1xf32>
    %33 = math.rsqrt %32 : vector<16x1xf32>
    %34 = vector.broadcast %33 : vector<16x1xf32> to vector<16x128xf32>
    %35 = arith.mulf %30, %34 : vector<16x128xf32>
    %c0_22 = arith.constant 0 : index
    %c0_23 = arith.constant 0 : index
    %36 = vector.load %arg8[%c0_22, %c0_23] : memref<1x128xf32, #tpu.memory_space<vmem>>, vector<1x128xf32>
    %37 = vector.broadcast %36 : vector<1x128xf32> to vector<16x128xf32>
    %38 = arith.mulf %35, %37 : vector<16x128xf32>
    %c0_24 = arith.constant 0 : index
    %c0_25 = arith.constant 0 : index
    %39 = vector.load %arg9[%c0_24, %c0_25] : memref<1x128xf32, #tpu.memory_space<vmem>>, vector<1x128xf32>
    %40 = vector.broadcast %39 : vector<1x128xf32> to vector<16x128xf32>
    %41 = arith.addf %38, %40 : vector<16x128xf32>
    %cst_26 = arith.constant 0.000000e+00 : f32
    %42 = vector.broadcast %cst_26 : f32 to vector<16x128xf32>
    %43 = arith.maximumf %41, %42 : vector<16x128xf32>
    %c0_27 = arith.constant 0 : index
    %c0_28 = arith.constant 0 : index
    %44 = vector.load %arg10[%c0_27, %c0_28] : memref<128x128xf32, #tpu.memory_space<vmem>>, vector<128x128xf32>
    %cst_29 = arith.constant dense<0.000000e+00> : vector<16x128xf32>
    %45 = tpu.matmul %43, %44, %cst_29 {dimension_numbers = #tpu.dot_dimension_numbers<[1], [0], [0], [1], [0, 0, 1, 1], [], []>} : vector<16x128xf32>, vector<128x128xf32>, vector<16x128xf32> -> vector<16x128xf32>
    %c0_30 = arith.constant 0 : index
    %c0_31 = arith.constant 0 : index
    %46 = vector.load %arg11[%c0_30, %c0_31] : memref<1x128xf32, #tpu.memory_space<vmem>>, vector<1x128xf32>
    %47 = vector.broadcast %46 : vector<1x128xf32> to vector<16x128xf32>
    %48 = arith.addf %45, %47 : vector<16x128xf32>
    %c0_32 = arith.constant 0 : index
    %c0_33 = arith.constant 0 : index
    %49 = vector.load %arg12[%c0_32, %c0_33] : memref<16x128xf32, #tpu.memory_space<vmem>>, vector<16x128xf32>
    tpu.vector_store %arg12[%c0_32, %c0_33], %48 {strides = array<i32>} : memref<16x128xf32, #tpu.memory_space<vmem>>, vector<16x128xf32>,
    return
  }
}

module attributes {stable_mosaic.version = 11 : i64} {
  func.func @_contrastive_kernel(%arg0: i32, %arg1: memref<2x8x128xf32, #tpu.memory_space<vmem>>, %arg2: memref<2x8x128xf32, #tpu.memory_space<vmem>>, %arg3: memref<2x128x256xf32, #tpu.memory_space<vmem>>, %arg4: memref<8x256xf32, #tpu.memory_space<vmem>>, %arg5: memref<2x8x128xf32, #tpu.memory_space<vmem>>, %arg6: memref<2x8x128xf32, #tpu.memory_space<vmem>>, %arg7: memref<2x8x1xf32, #tpu.memory_space<vmem>>, %arg8: memref<2x8x1xf32, #tpu.memory_space<vmem>>, %arg9: memref<2x8x1xf32, #tpu.memory_space<vmem>>) attributes {dimension_semantics = [#tpu.dimension_semantics<arbitrary>], iteration_bounds = array<i64: 2>, scalar_prefetch = 0 : i64, scratch_operands = 4 : i64, tpu.core_type = #tpu.core_type<tc>, window_params = [{pipeline_mode = #tpu.pipeline_mode<synchronous>, transform_indices = @transform_0, window_bounds = array<i64: 2, 8, 128>}, {pipeline_mode = #tpu.pipeline_mode<synchronous>, transform_indices = @transform_1, window_bounds = array<i64: 2, 8, 128>}, {transform_indices = @transform_2, window_bounds = array<i64: 2, 128, 256>}, {transform_indices = @transform_3, window_bounds = array<i64: 8, 256>}, {pipeline_mode = #tpu.pipeline_mode<synchronous>, transform_indices = @transform_4, window_bounds = array<i64: 2, 8, 128>}]} {
    %c0_i32 = arith.constant 0 : i32
    %0 = arith.cmpi eq, %arg0, %c0_i32 : i32
    %1 = arith.extui %0 : i1 to i32
    %c0_i32_0 = arith.constant 0 : i32
    %2 = arith.cmpi ne, %1, %c0_i32_0 : i32
    scf.if %2 {
      %c0_24 = arith.constant 0 : index
      %c0_25 = arith.constant 0 : index
      %c0_26 = arith.constant 0 : index
      %33 = vector.load %arg1[%c0_24, %c0_25, %c0_26] : memref<2x8x128xf32, #tpu.memory_space<vmem>>, vector<2x8x128xf32>
      %c0_27 = arith.constant 0 : index
      %c0_28 = arith.constant 0 : index
      %c0_29 = arith.constant 0 : index
      %34 = vector.load %arg2[%c0_27, %c0_28, %c0_29] : memref<2x8x128xf32, #tpu.memory_space<vmem>>, vector<2x8x128xf32>
      %35 = arith.mulf %33, %33 : vector<2x8x128xf32>
      %cst_30 = arith.constant dense<0.000000e+00> : vector<2x8xf32>
      %36 = vector.multi_reduction <add>, %35, %cst_30 [2] : vector<2x8x128xf32> to vector<2x8xf32>
      %37 = vector.shape_cast %36 : vector<2x8xf32> to vector<2x8x1xf32>
      %cst_31 = arith.constant 1.000000e-24 : f32
      %38 = vector.broadcast %cst_31 : f32 to vector<2x8x1xf32>
      %39 = arith.maximumf %37, %38 : vector<2x8x1xf32>
      %40 = math.rsqrt %39 : vector<2x8x1xf32>
      %41 = vector.broadcast %40 : vector<2x8x1xf32> to vector<2x8x128xf32>
      %42 = arith.mulf %33, %41 : vector<2x8x128xf32>
      %43 = arith.mulf %34, %34 : vector<2x8x128xf32>
      %cst_32 = arith.constant dense<0.000000e+00> : vector<2x8xf32>
      %44 = vector.multi_reduction <add>, %43, %cst_32 [2] : vector<2x8x128xf32> to vector<2x8xf32>
      %45 = vector.shape_cast %44 : vector<2x8xf32> to vector<2x8x1xf32>
      %cst_33 = arith.constant 1.000000e-24 : f32
      %46 = vector.broadcast %cst_33 : f32 to vector<2x8x1xf32>
      %47 = arith.maximumf %45, %46 : vector<2x8x1xf32>
      %48 = math.rsqrt %47 : vector<2x8x1xf32>
      %49 = vector.broadcast %48 : vector<2x8x1xf32> to vector<2x8x128xf32>
      %50 = arith.mulf %34, %49 : vector<2x8x128xf32>
      %51 = arith.mulf %42, %50 : vector<2x8x128xf32>
      %cst_34 = arith.constant dense<0.000000e+00> : vector<2x8xf32>
      %52 = vector.multi_reduction <add>, %51, %cst_34 [2] : vector<2x8x128xf32> to vector<2x8xf32>
      %53 = vector.shape_cast %52 : vector<2x8xf32> to vector<2x8x1xf32>
      %cst_35 = arith.constant 14.2857141 : f32
      %54 = vector.broadcast %cst_35 : f32 to vector<2x8x1xf32>
      %55 = arith.mulf %54, %53 : vector<2x8x1xf32>
      %c0_36 = arith.constant 0 : index
      %c0_37 = arith.constant 0 : index
      %c0_38 = arith.constant 0 : index
      %56 = vector.load %arg6[%c0_36, %c0_37, %c0_38] : memref<2x8x128xf32, #tpu.memory_space<vmem>>, vector<2x8x128xf32>
      tpu.vector_store %arg6[%c0_36, %c0_37, %c0_38], %42 {strides = array<i32>} : memref<2x8x128xf32, #tpu.memory_space<vmem>>, vector<2x8x128xf32>,
      %c0_39 = arith.constant 0 : index
      %c0_40 = arith.constant 0 : index
      %c0_41 = arith.constant 0 : index
      %57 = vector.load %arg7[%c0_39, %c0_40, %c0_41] : memref<2x8x1xf32, #tpu.memory_space<vmem>>, vector<2x8x1xf32>
      tpu.vector_store %arg7[%c0_39, %c0_40, %c0_41], %55 {strides = array<i32>} : memref<2x8x1xf32, #tpu.memory_space<vmem>>, vector<2x8x1xf32>,
      %c0_42 = arith.constant 0 : index
      %c0_43 = arith.constant 0 : index
      %c0_44 = arith.constant 0 : index
      %58 = vector.load %arg8[%c0_42, %c0_43, %c0_44] : memref<2x8x1xf32, #tpu.memory_space<vmem>>, vector<2x8x1xf32>
      tpu.vector_store %arg8[%c0_42, %c0_43, %c0_44], %55 {strides = array<i32>} : memref<2x8x1xf32, #tpu.memory_space<vmem>>, vector<2x8x1xf32>,
      %cst_45 = arith.constant 1.000000e+00 : f32
      %59 = vector.broadcast %cst_45 : f32 to vector<2x8x1xf32>
      %c0_46 = arith.constant 0 : index
      %c0_47 = arith.constant 0 : index
      %c0_48 = arith.constant 0 : index
      %60 = vector.load %arg9[%c0_46, %c0_47, %c0_48] : memref<2x8x1xf32, #tpu.memory_space<vmem>>, vector<2x8x1xf32>
      tpu.vector_store %arg9[%c0_46, %c0_47, %c0_48], %59 {strides = array<i32>} : memref<2x8x1xf32, #tpu.memory_space<vmem>>, vector<2x8x1xf32>,
    } else {
    }
    %c0 = arith.constant 0 : index
    %c0_1 = arith.constant 0 : index
    %c0_2 = arith.constant 0 : index
    %3 = vector.load %arg6[%c0, %c0_1, %c0_2] : memref<2x8x128xf32, #tpu.memory_space<vmem>>, vector<2x8x128xf32>
    %c0_3 = arith.constant 0 : index
    %c0_4 = arith.constant 0 : index
    %c0_5 = arith.constant 0 : index
    %4 = vector.load %arg3[%c0_3, %c0_4, %c0_5] : memref<2x128x256xf32, #tpu.memory_space<vmem>>, vector<2x128x256xf32>
    "tpu.trace_start"() <{level = 10 : i32, message = "dnc,dck->dnk"}> : () -> ()
    %cst = arith.constant dense<0.000000e+00> : vector<2x8x256xf32>
    %5 = tpu.matmul %3, %4, %cst {dimension_numbers = #tpu.dot_dimension_numbers<[2], [1], [1], [2], [0, 0, 0, 1, 1, 2], [0], [0]>} : vector<2x8x128xf32>, vector<2x128x256xf32>, vector<2x8x256xf32> -> vector<2x8x256xf32>
    "tpu.trace_stop"() : () -> ()
    %cst_6 = arith.constant 14.2857141 : f32
    %6 = vector.broadcast %cst_6 : f32 to vector<2x8x256xf32>
    %7 = arith.mulf %6, %5 : vector<2x8x256xf32>
    %8 = vector.extract_strided_slice %7 {offsets = [0, 0, 0], sizes = [1, 8, 256], strides = [1, 1, 1]} : vector<2x8x256xf32> to vector<1x8x256xf32>
    %9 = vector.shape_cast %8 : vector<1x8x256xf32> to vector<8x256xf32>
    %10 = vector.extract_strided_slice %7 {offsets = [1, 0, 0], sizes = [1, 8, 256], strides = [1, 1, 1]} : vector<2x8x256xf32> to vector<1x8x256xf32>
    %11 = vector.shape_cast %10 : vector<1x8x256xf32> to vector<8x256xf32>
    %12 = arith.addf %9, %11 : vector<8x256xf32>
    %c0_7 = arith.constant 0 : index
    %c0_8 = arith.constant 0 : index
    %13 = vector.load %arg4[%c0_7, %c0_8] : memref<8x256xf32, #tpu.memory_space<vmem>>, vector<8x256xf32>
    tpu.vector_store %arg4[%c0_7, %c0_8], %12 {strides = array<i32>} : memref<8x256xf32, #tpu.memory_space<vmem>>, vector<8x256xf32>,
    %c0_9 = arith.constant 0 : index
    %c0_10 = arith.constant 0 : index
    %c0_11 = arith.constant 0 : index
    %14 = vector.load %arg8[%c0_9, %c0_10, %c0_11] : memref<2x8x1xf32, #tpu.memory_space<vmem>>, vector<2x8x1xf32>
    %cst_12 = arith.constant dense<0xFF800000> : vector<2x8xf32>
    %15 = vector.multi_reduction <maximumf>, %7, %cst_12 [2] : vector<2x8x256xf32> to vector<2x8xf32>
    %16 = vector.shape_cast %15 : vector<2x8xf32> to vector<2x8x1xf32>
    %17 = arith.maximumf %14, %16 : vector<2x8x1xf32>
    %c0_13 = arith.constant 0 : index
    %c0_14 = arith.constant 0 : index
    %c0_15 = arith.constant 0 : index
    %18 = vector.load %arg9[%c0_13, %c0_14, %c0_15] : memref<2x8x1xf32, #tpu.memory_space<vmem>>, vector<2x8x1xf32>
    %19 = arith.subf %14, %17 : vector<2x8x1xf32>
    %20 = math.exp %19 : vector<2x8x1xf32>
    %21 = arith.mulf %18, %20 : vector<2x8x1xf32>
    %22 = vector.broadcast %17 : vector<2x8x1xf32> to vector<2x8x256xf32>
    %23 = arith.subf %7, %22 : vector<2x8x256xf32>
    %24 = math.exp %23 : vector<2x8x256xf32>
    %cst_16 = arith.constant dense<0.000000e+00> : vector<2x8xf32>
    %25 = vector.multi_reduction <add>, %24, %cst_16 [2] : vector<2x8x256xf32> to vector<2x8xf32>
    %26 = vector.shape_cast %25 : vector<2x8xf32> to vector<2x8x1xf32>
    %27 = arith.addf %21, %26 : vector<2x8x1xf32>
    %c0_17 = arith.constant 0 : index
    %c0_18 = arith.constant 0 : index
    %c0_19 = arith.constant 0 : index
    %28 = vector.load %arg9[%c0_17, %c0_18, %c0_19] : memref<2x8x1xf32, #tpu.memory_space<vmem>>, vector<2x8x1xf32>
    tpu.vector_store %arg9[%c0_17, %c0_18, %c0_19], %27 {strides = array<i32>} : memref<2x8x1xf32, #tpu.memory_space<vmem>>, vector<2x8x1xf32>,
    %c0_20 = arith.constant 0 : index
    %c0_21 = arith.constant 0 : index
    %c0_22 = arith.constant 0 : index
    %29 = vector.load %arg8[%c0_20, %c0_21, %c0_22] : memref<2x8x1xf32, #tpu.memory_space<vmem>>, vector<2x8x1xf32>
    tpu.vector_store %arg8[%c0_20, %c0_21, %c0_22], %17 {strides = array<i32>} : memref<2x8x1xf32, #tpu.memory_space<vmem>>, vector<2x8x1xf32>,
    %c1_i32 = arith.constant 1 : i32
    %30 = arith.cmpi eq, %arg0, %c1_i32 : i32
    %31 = arith.extui %30 : i1 to i32
    %c0_i32_23 = arith.constant 0 : i32
    %32 = arith.cmpi ne, %31, %c0_i32_23 : i32
    scf.if %32 {
      %c0_24 = arith.constant 0 : index
      %c0_25 = arith.constant 0 : index
      %c0_26 = arith.constant 0 : index
      %33 = vector.load %arg8[%c0_24, %c0_25, %c0_26] : memref<2x8x1xf32, #tpu.memory_space<vmem>>, vector<2x8x1xf32>
      %c0_27 = arith.constant 0 : index
      %c0_28 = arith.constant 0 : index
      %c0_29 = arith.constant 0 : index
      %34 = vector.load %arg9[%c0_27, %c0_28, %c0_29] : memref<2x8x1xf32, #tpu.memory_space<vmem>>, vector<2x8x1xf32>
      %35 = math.log %34 : vector<2x8x1xf32>
      %36 = arith.addf %33, %35 : vector<2x8x1xf32>
      %37 = tpu.iota {dimensions = array<i32: 2>} : vector<2x8x128xi32>
      %c0_i32_30 = arith.constant 0 : i32
      %38 = vector.broadcast %c0_i32_30 : i32 to vector<2x8x128xi32>
      %39 = arith.cmpi eq, %37, %38 : vector<2x8x128xi32>
      %c0_31 = arith.constant 0 : index
      %c0_32 = arith.constant 0 : index
      %c0_33 = arith.constant 0 : index
      %40 = vector.load %arg7[%c0_31, %c0_32, %c0_33] : memref<2x8x1xf32, #tpu.memory_space<vmem>>, vector<2x8x1xf32>
      %c1_i32_34 = arith.constant 1 : i32
      %41 = vector.broadcast %c1_i32_34 : i32 to vector<2x8x128xi32>
      %42 = arith.cmpi eq, %37, %41 : vector<2x8x128xi32>
      %cst_35 = arith.constant 0.000000e+00 : f32
      %43 = vector.shape_cast %36 : vector<2x8x1xf32> to vector<2x8x1xf32>
      %44 = vector.broadcast %43 : vector<2x8x1xf32> to vector<2x8x128xf32>
      %45 = vector.broadcast %cst_35 : f32 to vector<2x8x128xf32>
      %46 = arith.select %42, %44, %45 : vector<2x8x128xi1>, vector<2x8x128xf32>
      %47 = vector.shape_cast %40 : vector<2x8x1xf32> to vector<2x8x1xf32>
      %48 = vector.broadcast %47 : vector<2x8x1xf32> to vector<2x8x128xf32>
      %49 = arith.select %39, %48, %46 : vector<2x8x128xi1>, vector<2x8x128xf32>
      %c0_36 = arith.constant 0 : index
      %c0_37 = arith.constant 0 : index
      %c0_38 = arith.constant 0 : index
      %50 = vector.load %arg5[%c0_36, %c0_37, %c0_38] : memref<2x8x128xf32, #tpu.memory_space<vmem>>, vector<2x8x128xf32>
      tpu.vector_store %arg5[%c0_36, %c0_37, %c0_38], %49 {strides = array<i32>} : memref<2x8x128xf32, #tpu.memory_space<vmem>>, vector<2x8x128xf32>,
    } else {
    }
    return
  }
  func.func @transform_0(%arg0: i32) -> (i32, i32, i32) {
    %c0_i32 = arith.constant 0 : i32
    %c0_i32_0 = arith.constant 0 : i32
    %c0_i32_1 = arith.constant 0 : i32
    %c0_i32_2 = arith.constant 0 : i32
    return %c0_i32, %c0_i32_0, %c0_i32_1 : i32, i32, i32
  }
  func.func @transform_1(%arg0: i32) -> (i32, i32, i32) {
    %c0_i32 = arith.constant 0 : i32
    %c0_i32_0 = arith.constant 0 : i32
    %c0_i32_1 = arith.constant 0 : i32
    %c0_i32_2 = arith.constant 0 : i32
    return %c0_i32, %c0_i32_0, %c0_i32_1 : i32, i32, i32
  }
  func.func @transform_2(%arg0: i32) -> (i32, i32, i32) {
    %c0_i32 = arith.constant 0 : i32
    %c0_i32_0 = arith.constant 0 : i32
    %c0_i32_1 = arith.constant 0 : i32
    return %c0_i32, %c0_i32_0, %arg0 : i32, i32, i32
  }
  func.func @transform_3(%arg0: i32) -> (i32, i32) {
    %c0_i32 = arith.constant 0 : i32
    %c0_i32_0 = arith.constant 0 : i32
    return %c0_i32, %arg0 : i32, i32
  }
  func.func @transform_4(%arg0: i32) -> (i32, i32, i32) {
    %c0_i32 = arith.constant 0 : i32
    %c0_i32_0 = arith.constant 0 : i32
    %c0_i32_1 = arith.constant 0 : i32
    %c0_i32_2 = arith.constant 0 : i32
    return %c0_i32, %c0_i32_0, %c0_i32_1 : i32, i32, i32
  }
}

</mosaic_0001>

<bundles_post_ra>
// kernel: sub.1
= control target key start
LH: loop header
LB: loop body
LE: loop exit
PB: predicated region body
PF: predicated region fallthrough
CT: control target
= control target key end

     0   :  { %s34_s0 = inlined_call_operand.vmem [shape: f32[2,8], index: 0, kind: input, shape index: {}]   ;;  %s35_s1 = inlined_call_operand.vmem [shape: f32[2,8], index: 1, kind: input, shape index: {}]   ;;  %s36_s2 = inlined_call_operand.vmem [shape: f32[2,8], index: 2, kind: output, shape index: {}]  }
   0x1   :  { %v3_v0 = vld [vmem:[%s34_s0] sm:$0x3] }
   0x2   :  { %v4_v1 = vld [vmem:[%s35_s1] sm:$0x3] }
   0x3   :  { %v7_v2 = vsub.f32 %v3_v0, %v4_v1 }
   0x5   :  { %9 = vst [vmem:[%s36_s2] sm:$0x3] %v7_v2 }

// kernel: multimodal_moco_forward.2
= control target key start
LH: loop header
LB: loop body
LE: loop exit
PB: predicated region body
PF: predicated region fallthrough
CT: control target
= control target key end

     0   :  { %17 = vsyncpa [#allocation3], 0  ;;  %s752_s0 = inlined_call_operand.hbm [shape: f32[8,256], index: 0, kind: input, shape index: {}]   ;;  %s753_s1 = inlined_call_operand.vmem [shape: f32[8,128], index: 1, kind: input, shape index: {}]   ;;  %s754_s2 = inlined_call_operand.hbm [shape: f32[256,128], index: 2, kind: input, shape index: {}]   ;;  %s755_s3 = inlined_call_operand.vmem [shape: f32[1,128], index: 3, kind: input, shape index: {}]   ;;  %s756_s4 = inlined_call_operand.hbm [shape: f32[128,128], index: 4, kind: input, shape index: {}]   ;;  %s757_s5 = inlined_call_operand.vmem [shape: f32[1,128], index: 5, kind: input, shape index: {}]   ;;  %s758_s6 = inlined_call_operand.hbm [shape: f32[128,128], index: 6, kind: input, shape index: {}]   ;;  %s759_s7 = inlined_call_operand.vmem [shape: f32[1,128], index: 7, kind: input, shape index: {}]   ;;  %s760_s8 = inlined_call_operand.vmem [shape: f32[1,128], index: 8, kind: input, shape index: {}]   ;;  %s761_s9 = inlined_call_operand.hbm [shape: f32[1,128], index: 9, kind: input, shape index: {}]   ;;  %s762_s10 = inlined_call_operand.hbm [shape: f32[128,128], index: 10, kind: input, shape index: {}]   ;;  %s763_s11 = inlined_call_operand.hbm [shape: f32[1,128], index: 11, kind: input, shape index: {}]   ;;  %s764_s12 = inlined_call_operand.vmem [shape: f32[16,128], index: 12, kind: output, shape index: {}]  }
   0x1   :  { %18 = vsyncpa [#allocation5], 0 }
   0x2   :  { %19 = vsyncpa [#allocation8], 0  ;;  %s38_s23 = sshll.u32 %s754_s2, 4  ;;  %s39_s23 = int_to_ptr.hbm [resolvable:$true] %s38_s23 }
   0x3   :  { %20 = vsyncpa [#allocation11], 0  ;;  %s618_s24 = smov [#allocation4]   ;;  %s68_s28 = sshll.u32 %s758_s6, 4  ;;  %s69_s28 = int_to_ptr.hbm [resolvable:$true] %s68_s28 }
   0x4   :  { %s40_s25 = sshll.u32 %s618_s24, 4  ;;  %s619_s29 = smov 128   ;;  %s41_s25 = int_to_ptr.vmem [resolvable:$true] %s40_s25 }
   0x5   :  { %s620_s30 = smov 8   ;;  %s621_s13 = smov [#allocation7]  }
   0x6   :  { %46 = dma.hbm_to_vmem [thread:$0]  %s39_s23, 4096, %s41_s25, [#allocation5], %s619_s29, %s619_s29, %s620_s30  }
   0x7   :  { %s70_s14 = sshll.u32 %s621_s13, 4  ;;  %s96_s16 = sshll.u32 %s762_s10, 4  ;;  %s71_s14 = int_to_ptr.vmem [resolvable:$true] %s70_s14  ;;  %s97_s16 = int_to_ptr.hbm [resolvable:$true] %s96_s16 }
   0x8   :  { %76 = dma.hbm_to_vmem [thread:$0]  %s69_s28, 2048, %s71_s14, [#allocation8], %s619_s29, %s619_s29, %s620_s30  }
   0x9   :  { %s26_s18 = sshll.u32 %s752_s0, 4  ;;  %s622_s19 = smov [#allocation10]   ;;  %s27_s18 = int_to_ptr.hbm [resolvable:$true] %s26_s18 }
   0xa   :  { %s98_s20 = sshll.u32 %s622_s19, 4  ;;  %s623_s21 = smov [#allocation2]   ;;  %s99_s20 = int_to_ptr.vmem [resolvable:$true] %s98_s20 }
   0xb   :  { %104 = dma.hbm_to_vmem [thread:$0]  %s97_s16, 2048, %s99_s20, [#allocation11], %s619_s29, %s619_s29, %s620_s30  }
   0xc   :  { %s28_s10 = sshll.u32 %s623_s21, 4  ;;  %s53_s24 = sshll.u32 %s756_s4, 4  ;;  %s29_s10 = int_to_ptr.vmem [resolvable:$true] %s28_s10  ;;  %s54_s24 = int_to_ptr.hbm [resolvable:$true] %s53_s24 }
   0xd   :  { %31 = dma.hbm_to_vmem [thread:$0]  %s27_s18, 256, %s29_s10, [#allocation3]  }
   0xe   :  { %s86_s0 = sshll.u32 %s761_s9, 4  ;;  %s624_s27 = smov [#allocation6]   ;;  %s87_s0 = int_to_ptr.hbm [resolvable:$true] %s86_s0 }
   0xf   :  { %s55_s28 = sshll.u32 %s624_s27, 4  ;;  %s625_s13 = smov [#allocation9]   ;;  %s56_s28 = int_to_ptr.vmem [resolvable:$true] %s55_s28 }
  0x10   :  { %61 = dma.hbm_to_vmem [thread:$0]  %s54_s24, 2048, %s56_s28, [#allocation5], %s619_s29, %s619_s29, %s620_s30  }
  0x11   :  { %s88_s14 = sshll.u32 %s625_s13, 4  ;;  %s110_s4 = sshll.u32 %s763_s11, 4  ;;  %s89_s14 = int_to_ptr.vmem [resolvable:$true] %s88_s14  ;;  %s111_s4 = int_to_ptr.hbm [resolvable:$true] %s110_s4 }
  0x12   :  { %91 = dma.hbm_to_vmem [thread:$0]  %s87_s0, 16, %s89_s14, [#allocation8]  }
  0x13   :  { %s626_s16 = smov [#allocation12]  }
  0x14   :  { %s112_s6 = sshll.u32 %s626_s16, 4  ;;  %s113_s6 = int_to_ptr.vmem [resolvable:$true] %s112_s6 }
  0x15   :  { %115 = dma.hbm_to_vmem [thread:$0]  %s111_s4, 16, %s113_s6, [#allocation11]  }
  0x16   :  { %610 = dma.done.wait [#allocation3], 256  }
  0x17   :  { %611 = vsyncadd [#allocation3], 4294967040 }
  0x18   :  { %612 = dma.done.wait [#allocation5], 6144  }
  0x19   :  { %613 = vsyncadd [#allocation5], 4294961152 }
  0x1a   :  { %614 = dma.done.wait [#allocation8], 2064  }
  0x1b   :  { %615 = vsyncadd [#allocation8], 4294965232 }
  0x1c   :  { %616 = dma.done.wait [#allocation11], 2064  }
  0x1d   :  { %617 = vsyncadd [#allocation11], 4294965232  ;;  %v161_v0 = vld [vmem:[#allocation4 + $0x78] sm:$0xff]  ;;  %v160_v1 = vld [vmem:[#allocation4 + $0x70] sm:$0xff] }
  0x1e   :  { %182 = vmatpush.msra.mxu1 %v161_v0  ;;  %v159_v2 = vld [vmem:[#allocation4 + $0x68] sm:$0xff]  ;;  %v158_v3 = vld [vmem:[#allocation4 + $0x60] sm:$0xff]  ;;  %v157_v4 = vld [vmem:[#allocation4 + $0x58] sm:$0xff] }
  0x1f   :  { %v238_v5 = vld [vmem:[#allocation6 + $0x78] sm:$0xff]  ;;  %v237_v6 = vld [vmem:[#allocation6 + $0x70] sm:$0xff]  ;;  %v236_v8 = vld [vmem:[#allocation6 + $0x68] sm:$0xff] }
  0x20   :  { %183 = vmatpush.msra.mxu1 %v160_v1  ;;  %243 = vmatpush.msra.mxu2 %v238_v5  ;;  %v156_v7 = vld [vmem:[#allocation4 + $0x50] sm:$0xff]  ;;  %v155_v9 = vld [vmem:[#allocation4 + $0x48] sm:$0xff]  ;;  %v235_v10 = vld [vmem:[#allocation6 + $0x60] sm:$0xff] }
  0x21   :  { %v154_v11 = vld [vmem:[#allocation4 + $0x40] sm:$0xff]  ;;  %v234_v12 = vld [vmem:[#allocation6 + $0x58] sm:$0xff]  ;;  %v233_v14 = vld [vmem:[#allocation6 + $0x50] sm:$0xff] }
  0x22   :  { %184 = vmatpush.msra.mxu1 %v159_v2  ;;  %244 = vmatpush.msra.mxu2 %v237_v6  ;;  %v153_v13 = vld [vmem:[#allocation4 + $0x38] sm:$0xff]  ;;  %v152_v15 = vld [vmem:[#allocation4 + $0x30] sm:$0xff]  ;;  %v232_v16 = vld [vmem:[#allocation6 + $0x48] sm:$0xff] }
  0x23   :  { %v151_v17 = vld [vmem:[#allocation4 + $0x28] sm:$0xff]  ;;  %v231_v18 = vld [vmem:[#allocation6 + $0x40] sm:$0xff]  ;;  %v230_v20 = vld [vmem:[#allocation6 + $0x38] sm:$0xff] }
  0x24   :  { %185 = vmatpush.msra.mxu1 %v158_v3  ;;  %245 = vmatpush.msra.mxu2 %v236_v8  ;;  %v150_v19 = vld [vmem:[#allocation4 + $0x20] sm:$0xff]  ;;  %v149_v21 = vld [vmem:[#allocation4 + $0x18] sm:$0xff]  ;;  %v229_v22 = vld [vmem:[#allocation6 + $0x30] sm:$0xff] }
  0x25   :  { %v148_v23 = vld [vmem:[#allocation4 + $0x10] sm:$0xff]  ;;  %v228_v24 = vld [vmem:[#allocation6 + $0x28] sm:$0xff]  ;;  %v227_v26 = vld [vmem:[#allocation6 + $0x20] sm:$0xff] }
  0x26   :  { %186 = vmatpush.msra.mxu1 %v157_v4  ;;  %246 = vmatpush.msra.mxu2 %v235_v10  ;;  %v147_v25 = vld [vmem:[#allocation4 + $0x8] sm:$0xff]  ;;  %v146_v27 = vld [vmem:[#allocation4] sm:$0xff]  ;;  %v226_v28 = vld [vmem:[#allocation6 + $0x18] sm:$0xff] }
  0x27   :  { %v177_v29 = vld [vmem:[#allocation4 + $0xf8] sm:$0xff]  ;;  %v144_v30 = vld [vmem:[#allocation2] sm:$0xff]  ;;  %v224_v34 = vld [vmem:[#allocation6 + $0x8] sm:$0xff] }
  0x28   :  { %187 = vmatpush.msra.mxu1 %v156_v7  ;;  %247 = vmatpush.msra.mxu2 %v234_v12  ;;  %v225_v31 = vld [vmem:[#allocation6 + $0x10] sm:$0xff]  ;;  %v278_v33 = vld [vmem:[#allocation7 + $0x78] sm:$0xff]  ;;  %v175_v36 = vld [vmem:[#allocation4 + $0xe8] sm:$0xff] }
  0x29   :  { %v176_v32 = vld [vmem:[#allocation4 + $0xf0] sm:$0xff]  ;;  %283 = vmatpush.msra.mxu3 %v278_v33  ;;  %v276_v37 = vld [vmem:[#allocation7 + $0x68] sm:$0xff]  ;;  %v223_v38 = vld [vmem:[#allocation6] sm:$0xff] }
  0x2a   :  { %188 = vmatpush.msra.mxu1 %v155_v9  ;;  %248 = vmatpush.msra.mxu2 %v233_v14  ;;  %v277_v35 = vld [vmem:[#allocation7 + $0x70] sm:$0xff]  ;;  %v174_v39 = vld [vmem:[#allocation4 + $0xe0] sm:$0xff]  ;;  %v173_v42 = vld [vmem:[#allocation4 + $0xd8] sm:$0xff] }
  0x2b   :  { %284 = vmatpush.msra.mxu3 %v277_v35  ;;  %v222_v40 = vld [vmem:[%s753_s1] sm:$0xff]  ;;  %v275_v41 = vld [vmem:[#allocation7 + $0x60] sm:$0xff]  ;;  %v274_v43 = vld [vmem:[#allocation7 + $0x58] sm:$0xff] }
  0x2c   :  { %189 = vmatpush.msra.mxu1 %v154_v11  ;;  %249 = vmatpush.msra.mxu2 %v232_v16  ;;  %v172_v44 = vld [vmem:[#allocation4 + $0xd0] sm:$0xff]  ;;  %v171_v46 = vld [vmem:[#allocation4 + $0xc8] sm:$0xff]  ;;  %v170_v48 = vld [vmem:[#allocation4 + $0xc0] sm:$0xff]  ;;  %v627_v16 = vmov 128.0  }
  0x2d   :  { %285 = vmatpush.msra.mxu3 %v276_v37  ;;  %v273_v45 = vld [vmem:[#allocation7 + $0x50] sm:$0xff]  ;;  %v272_v47 = vld [vmem:[#allocation7 + $0x48] sm:$0xff]  ;;  %v271_v49 = vld [vmem:[#allocation7 + $0x40] sm:$0xff]  ;;  %436 = vrcp.f32 %v627_v16 }
  0x2e   :  { %190 = vmatpush.msra.mxu1 %v153_v13  ;;  %250 = vmatpush.msra.mxu2 %v231_v18  ;;  %v169_v50 = vld [vmem:[#allocation4 + $0xb8] sm:$0xff]  ;;  %v168_v52 = vld [vmem:[#allocation4 + $0xb0] sm:$0xff]  ;;  %v167_v54 = vld [vmem:[#allocation4 + $0xa8] sm:$0xff] }
  0x2f   :  { %286 = vmatpush.msra.mxu3 %v275_v41  ;;  %v270_v51 = vld [vmem:[#allocation7 + $0x38] sm:$0xff]  ;;  %v269_v53 = vld [vmem:[#allocation7 + $0x30] sm:$0xff]  ;;  %v166_v55 = vld [vmem:[#allocation4 + $0xa0] sm:$0xff] }
  0x30   :  { %191 = vmatpush.msra.mxu1 %v152_v15  ;;  %251 = vmatpush.msra.mxu2 %v230_v20  ;;  %v165_v56 = vld [vmem:[#allocation4 + $0x98] sm:$0xff]  ;;  %v164_v57 = vld [vmem:[#allocation4 + $0x90] sm:$0xff]  ;;  %v163_v58 = vld [vmem:[#allocation4 + $0x88] sm:$0xff] }
  0x31   :  { %287 = vmatpush.msra.mxu3 %v274_v43  ;;  %v162_v59 = vld [vmem:[#allocation4 + $0x80] sm:$0xff]  ;;  %v145_v60 = vld [vmem:[#allocation2 + $0x8] sm:$0xff]  ;;  %v268_v61 = vld [vmem:[#allocation7 + $0x28] sm:$0xff] }
  0x32   :  { %192 = vmatpush.msra.mxu1 %v151_v17  ;;  %252 = vmatpush.msra.mxu2 %v229_v22  ;;  %v267_v62 = vld [vmem:[#allocation7 + $0x20] sm:$0xff]  ;;  %v266_v63 = vld [vmem:[#allocation7 + $0x18] sm:$0xff]  ;;  %v265_v0 = vld [vmem:[#allocation7 + $0x10] sm:$0xff] }
  0x33   :  { %288 = vmatpush.msra.mxu3 %v273_v45  ;;  %v264_v1 = vld [vmem:[#allocation7 + $0x8] sm:$0xff]  ;;  %v263_v2 = vld [vmem:[#allocation7] sm:$0xff]  ;;  %v430_v4 = vld [vmem:[%s755_s3] ss:$0 sm:$0xff]  ;;  %v437_v17 = vpop.eup %436 }
  0x34   :  { %193 = vmatpush.msra.mxu1 %v150_v19  ;;  %253 = vmatpush.msra.mxu2 %v228_v24  ;;  %v431_v8 = vld [vmem:[%s757_s5] ss:$0 sm:$0xff]  ;;  %v311_v18 = vmul.f32 128.0, %v437_v17  ;;  %v382_v19 = vld [vmem:[#allocation10 + $0x78] sm:$0xff]  ;;  %vm315_vm0 = vweird.f32 %v437_v17 }
  0x35   :  { %289 = vmatpush.msra.mxu3 %v272_v47  ;;  %v432_v11 = vld [vmem:[%s759_s7] ss:$0 sm:$0xff]  ;;  %387 = vmatpush.msra.mxu0 %v382_v19  ;;  %v378_v35 = vld [vmem:[#allocation10 + $0x58] sm:$0xff] }
  0x36   :  { %194 = vmatpush.msra.mxu1 %v149_v21  ;;  %254 = vmatpush.msra.mxu2 %v227_v26  ;;  %v312_v20 = vsub.f32 1.0, %v311_v18  ;;  %v380_v33 = vld [vmem:[#allocation10 + $0x68] sm:$0xff]  ;;  %v370_v43 = vld [vmem:[#allocation10 + $0x18] sm:$0xff] }
  0x37   :  { %290 = vmatpush.msra.mxu3 %v271_v49  ;;  %v376_v37 = vld [vmem:[#allocation10 + $0x48] sm:$0xff] }
  0x38   :  { %195 = vmatpush.msra.mxu1 %v148_v23  ;;  %255 = vmatpush.msra.mxu2 %v226_v28  ;;  %v313_v21 = vmul.f32 %v437_v17, %v312_v20  ;;  %v372_v41 = vld [vmem:[#allocation10 + $0x28] sm:$0xff] }
  0x39   :  { %291 = vmatpush.msra.mxu3 %v270_v51  ;;  %v368_v45 = vld [vmem:[#allocation10 + $0x8] sm:$0xff] }
  0x3a   :  { %196 = vmatpush.msra.mxu1 %v147_v25  ;;  %256 = vmatpush.msra.mxu2 %v225_v31  ;;  %v314_v22 = vadd.f32 %v437_v17, %v313_v21 }
  0x3b   :  { %292 = vmatpush.msra.mxu3 %v269_v53 }
  0x3c   :  { %197 = vmatpush.msra.mxu1 %v146_v27  ;;  %257 = vmatpush.msra.mxu2 %v224_v34  ;;  %v316_v23 = vsel %vm315_vm0, %v437_v17, %v314_v22  ;;  %v379_v34 = vld [vmem:[#allocation10 + $0x60] sm:$0xff] }
  0x3d   :  { %198 = vmatmul.f32.vlgmr.msra.gmra.mxu1 %v144_v30  ;;  %293 = vmatpush.msra.mxu3 %v268_v61  ;;  %v433_v61 = vld [vmem:[%s760_s8] ss:$0 sm:$0xff] }
  0x3e   :  { %202 = vmatpush.msrb.mxu1 %v177_v29  ;;  %258 = vmatpush.msra.mxu2 %v223_v38  ;;  %v375_v38 = vld [vmem:[#allocation10 + $0x40] sm:$0xff] }
  0x3f   :  { %259 = vmatmul.f32.vlgmr.msra.gmra.mxu2 %v222_v40  ;;  %294 = vmatpush.msra.mxu3 %v267_v62  ;;  %v373_v40 = vld [vmem:[#allocation10 + $0x30] sm:$0xff] }
  0x40   :  { %203 = vmatpush.msrb.mxu1 %v176_v32  ;;  %v381_v32 = vld [vmem:[#allocation10 + $0x70] sm:$0xff] }
  0x41   :  { %295 = vmatpush.msra.mxu3 %v266_v63  ;;  %388 = vmatpush.msra.mxu0 %v381_v32 }
  0x42   :  { %204 = vmatpush.msrb.mxu1 %v175_v36  ;;  %v377_v36 = vld [vmem:[#allocation10 + $0x50] sm:$0xff] }
  0x43   :  { %296 = vmatpush.msra.mxu3 %v265_v0  ;;  %389 = vmatpush.msra.mxu0 %v380_v33 }
  0x44   :  { %205 = vmatpush.msrb.mxu1 %v174_v39  ;;  %v374_v39 = vld [vmem:[#allocation10 + $0x38] sm:$0xff] }
  0x45   :  { %297 = vmatpush.msra.mxu3 %v264_v1  ;;  %390 = vmatpush.msra.mxu0 %v379_v34  ;;  %v434_v1 = vld [vmem:[#allocation9] ss:$0 sm:$0xff] }
  0x46   :  { %206 = vmatpush.msrb.mxu1 %v173_v42  ;;  %v371_v42 = vld [vmem:[#allocation10 + $0x20] sm:$0xff] }
  0x47   :  { %298 = vmatpush.msra.mxu3 %v263_v2  ;;  %391 = vmatpush.msra.mxu0 %v378_v35 }
  0x48   :  { %207 = vmatpush.msrb.mxu1 %v172_v44  ;;  %v369_v44 = vld [vmem:[#allocation10 + $0x10] sm:$0xff] }
  0x49   :  { %392 = vmatpush.msra.mxu0 %v377_v36 }
  0x4a   :  { %208 = vmatpush.msrb.mxu1 %v171_v46  ;;  %v367_v46 = vld [vmem:[#allocation10] sm:$0xff] }
  0x4b   :  { %393 = vmatpush.msra.mxu0 %v376_v37 }
  0x4c   :  { %209 = vmatpush.msrb.mxu1 %v170_v48 }
  0x4d   :  { %394 = vmatpush.msra.mxu0 %v375_v38 }
  0x4e   :  { %210 = vmatpush.msrb.mxu1 %v169_v50 }
  0x4f   :  { %395 = vmatpush.msra.mxu0 %v374_v39 }
  0x50   :  { %211 = vmatpush.msrb.mxu1 %v168_v52 }
  0x51   :  { %396 = vmatpush.msra.mxu0 %v373_v40 }
  0x52   :  { %212 = vmatpush.msrb.mxu1 %v167_v54 }
  0x53   :  { %397 = vmatpush.msra.mxu0 %v372_v41 }
  0x54   :  { %213 = vmatpush.msrb.mxu1 %v166_v55 }
  0x55   :  { %398 = vmatpush.msra.mxu0 %v371_v42 }
  0x56   :  { %214 = vmatpush.msrb.mxu1 %v165_v56 }
  0x57   :  { %399 = vmatpush.msra.mxu0 %v370_v43 }
  0x58   :  { %215 = vmatpush.msrb.mxu1 %v164_v57 }
  0x59   :  { %400 = vmatpush.msra.mxu0 %v369_v44 }
  0x5a   :  { %216 = vmatpush.msrb.mxu1 %v163_v58 }
  0x5b   :  { %401 = vmatpush.msra.mxu0 %v368_v45 }
  0x5c   :  { %217 = vmatpush.msrb.mxu1 %v162_v59 }
  0x5d   :  { %218 = vmatmul.f32.vlgmr.msrb.gmra.mxu1 %v145_v60  ;;  %402 = vmatpush.msra.mxu0 %v367_v46 }
  0xba   :  { %v199_v3 = vpop.f32.mrf.mxu1 }
  0xbb   :  { %v200_v5 = vadd.f32 %v430_v4, %v199_v3 }
  0xc2   :  { %v260_v9 = vpop.f32.mrf.mxu2 }
  0xc3   :  { %v261_v10 = vadd.f32 %v431_v8, %v260_v9 }
  0xda   :  { %v219_v6 = vpop.f32.mrf.mxu1 }
  0xdb   :  { %v220_v7 = vadd.f32 %v219_v6, %v200_v5 }
  0xdd   :  { %299 = vmatmul.f32.vlgmr.msra.gmra.mxu3 %v220_v7 }
  0xe5   :  { %302 = vmatmul.f32.gmra.mxu3 %v261_v10 }
 0x160   :  { %v300_v12 = vpop.f32.mrf.mxu3 }
 0x161   :  { %v301_v13 = vadd.f32 %v432_v11, %v300_v12 }
 0x163   :  { %306 = vadd.xlane.f32.xlu0 %v301_v13 }
 0x168   :  { %v303_v14 = vpop.f32.mrf.mxu3 }
 0x169   :  { %v304_v15 = vadd.f32 %v432_v11, %v303_v14 }
 0x16b   :  { %308 = vadd.xlane.f32.xlu0 %v304_v15 }
 0x1d6   :  { %v307_v24 = vpop.xlane.xlu0 %306 }
 0x1d7   :  { %v317_v25 = vmul.f32 %v316_v23, %v307_v24 }
 0x1d9   :  { %v319_v26 = vsub.f32 %v301_v13, %v317_v25  ;;  %v435_v13 = vld [vmem:[#allocation12] ss:$0 sm:$0xff] }
 0x1db   :  { %v321_v27 = vmul.f32 %v319_v26, %v319_v26 }
 0x1dd   :  { %323 = vadd.xlane.f32.xlu1 %v321_v27 }
 0x1de   :  { %v309_v28 = vpop.xlane.xlu0 %308 }
 0x1df   :  { %v318_v29 = vmul.f32 %v316_v23, %v309_v28 }
 0x1e1   :  { %v738_v30 = vsub.f32 %v304_v15, %v318_v29 }
 0x1e3   :  { %v322_v31 = vmul.f32 %v738_v30, %v738_v30 }
 0x1e5   :  { %325 = vadd.xlane.f32.xlu1 %v322_v31 }
 0x250   :  { %v324_v47 = vpop.xlane.xlu1 %323 }
 0x251   :  { %v327_v48 = vmul.f32 %v324_v47, %v316_v23 }
 0x253   :  { %v329_v49 = vadd.f32 1e-05, %v327_v48 }
 0x255   :  { %438 = vrsqrt.f32 %v329_v49  ;;  %vm337_vm2 = vweird.f32 %v329_v49 }
 0x258   :  { %v326_v50 = vpop.xlane.xlu1 %325 }
 0x259   :  { %v328_v51 = vmul.f32 %v326_v50, %v316_v23 }
 0x25b   :  { %v439_v52 = vpop.eup %438  ;;  %v330_v53 = vadd.f32 1e-05, %v328_v51 }
 0x25c   :  { %v332_v54 = vmul.f32 %v439_v52, %v329_v49  ;;  %vm338_vm1 = vweird.f32 %v439_v52 }
 0x25d   :  { %440 = vrsqrt.f32 %v330_v53  ;;  %vm339_vm3 = vmor %vm337_vm2, %vm338_vm1  ;;  %vm347_vm5 = vweird.f32 %v330_v53 }
 0x25e   :  { %v333_v55 = vmul.f32 %v439_v52, %v332_v54 }
 0x260   :  { %v334_v56 = vmul.f32 0.5, %v333_v55 }
 0x262   :  { %v335_v57 = vsub.f32 1.5, %v334_v56 }
 0x263   :  { %v441_v58 = vpop.eup %440 }
 0x264   :  { %v336_v59 = vmul.f32 %v439_v52, %v335_v57  ;;  %v342_v60 = vmul.f32 %v441_v58, %v330_v53  ;;  %vm348_vm4 = vweird.f32 %v441_v58 }
 0x265   :  { %vm349_vm6 = vmor %vm347_vm5, %vm348_vm4 }
 0x266   :  { %v343_v62 = vmul.f32 %v441_v58, %v342_v60  ;;  %v340_v63 = vsel %vm339_vm3, %v439_v52, %v336_v59 }
 0x267   :  { %v351_v0 = vmul.f32 %v340_v63, %v319_v26 }
 0x268   :  { %v344_v2 = vmul.f32 0.5, %v343_v62 }
 0x269   :  { %v357_v3 = vmul.f32 %v433_v61, %v351_v0 }
 0x26a   :  { %v345_v4 = vsub.f32 1.5, %v344_v2 }
 0x26b   :  { %v363_v5 = vadd.f32 %v434_v1, %v357_v3 }
 0x26c   :  { %v346_v6 = vmul.f32 %v441_v58, %v345_v4 }
 0x26d   :  { %v365_v7 = vmax.f32 %v363_v5, 0.0 }
 0x26e   :  { %v350_v8 = vsel %vm349_vm6, %v441_v58, %v346_v6 }
 0x26f   :  { %403 = vmatmul.f32.vlgmr.msra.gmra.mxu0 %v365_v7  ;;  %v352_v9 = vmul.f32 %v350_v8, %v738_v30 }
 0x271   :  { %v358_v10 = vmul.f32 %v433_v61, %v352_v9 }
 0x273   :  { %v364_v11 = vadd.f32 %v434_v1, %v358_v10 }
 0x275   :  { %v366_v12 = vmax.f32 %v364_v11, 0.0 }
 0x277   :  { %406 = vmatmul.f32.gmra.mxu0 %v366_v12 }
 0x2ec   :  { %v404_v14 = vpop.f32.mrf.mxu0 }
 0x2ed   :  { %v405_v15 = vadd.f32 %v435_v13, %v404_v14 }
 0x2ef   :  { %410 = vst [vmem:[%s764_s12] sm:$0xff] %v405_v15 }
 0x2f4   :  { %v407_v16 = vpop.f32.mrf.mxu0 }
 0x2f5   :  { %v408_v17 = vadd.f32 %v435_v13, %v407_v16 }
 0x2f7   :  { %411 = vst [vmem:[%s764_s12 + $0x8] sm:$0xff] %v408_v17 }
 0x2f8   :  { %416 = vsyncpa [#allocation3], 1 }
 0x2f9   :  { %417 = vsyncpa [#allocation5], 1 }
 0x2fa   :  { %418 = vsyncpa [#allocation8], 1 }
 0x2fb   :  { %419 = vsyncpa [#allocation11], 1 }

// kernel: multimodal_moco_forward.3
= control target key start
LH: loop header
LB: loop body
LE: loop exit
PB: predicated region body
PF: predicated region fallthrough
CT: control target
= control target key end

     0   :  { %10 = vsyncpa [#allocation7], 0  ;;  %s1018_s0 = inlined_call_operand.vmem [shape: f32[2,8,128], index: 0, kind: input, shape index: {}]   ;;  %s1019_s1 = inlined_call_operand.vmem [shape: f32[2,8,128], index: 1, kind: input, shape index: {}]   ;;  %s1020_s2 = inlined_call_operand.hbm [shape: f32[2,128,512], index: 2, kind: input, shape index: {}]   ;;  %s1021_s3 = inlined_call_operand.vmem [shape: f32[8,512], index: 3, kind: output, shape index: {0}]   ;;  %s1022_s4 = inlined_call_operand.vmem [shape: f32[2,8,128], index: 4, kind: output, shape index: {1}]  }
   0x1   :  { %12 = vsyncpa [#allocation7 + $0x1], 0  ;;  %s819_s15 = smov 0   ;;  %s821_s16 = smov 0  }
   0x2   :  { %s823_s17 = smov 0   ;;  %s825_s18 = smov 0  }
   0x3 LB: > { %s838_s19 = sadd.s32 4294967295, %s786_s18   ;;  %s841_s20 = sadd.s32 1, %s786_s18   ;;  %s786_s18 = sphi %s825_s18, %s1029_s18   ;;  %s782_s17 = sphi %s823_s17, %s1028_s17   ;;  %s778_s16 = sphi %s821_s16, %s1027_s16   ;;  %s774_s15 = sphi %s819_s15, %s1026_s15  }
   0x4   : > { %s64_s21 = ssub.s32 %s786_s18, %s841_s20  ;;  %s67_s22 = sadd.s32 1, %s782_s17 }
   0x5   : > { %p65_p0 = scmp.eq.s32.totalorder %s64_s21, 0  ;;  %p74_p1 = scmp.ne.s32.totalorder %s782_s17, %s778_s16 }
   0x6   : > { %p75_p2 = scmp.eq.s32.totalorder %s786_s18, 0  ;;  %p80_p3 = scmp.ne.s32.totalorder %s778_s16, %s774_s15 }
   0x7   : > { %s851_s23 = scalar_select %p65_p0, %s782_s17, %s67_s22  }
   0x8   : > { %p853_p4 = por %p75_p2, %p74_p1  ;;  %p81_p5 = scmp.eq.s32.totalorder %s838_s19, 0 }
   0x9   : > { %p655_p6 = scmp.lt.s32.totalorder %s786_s18, 2  ;;  %s157_s26 = sand.u32 1, %s782_s17  }
   0xa   : > { %p859_p7 = por %p81_p5, %p80_p3  ;;  %s637_s27 = sshll.u32 %s157_s26, 9 }
   0xb   : > { %s648_s28 = sshll.u32 %s786_s18, 4  ;;  %s161_s6 = scalar_lea.vmem [#allocation6], %s637_s27 }
   0xc   : > { %s166_s5 = scalar_lea.hbm %s1020_s2, %s648_s28  ;;  %s169_s7 = sshll.u32 %s161_s6, 4  ;;  %s170_s7 = int_to_ptr.vmem [resolvable:$true] %s169_s7 }
   0xd   : > { %s167_s8 = sshll.u32 %s166_s5, 4  ;;  %p870_p8 = pnand %p655_p6, %p853_p4  ;;  %s168_s8 = int_to_ptr.hbm [resolvable:$true] %s167_s8 }
   0xe   : > { %s158_s10 = scalar_lea.sflag [#allocation7], %s157_s26  ;;  %s722_s11 = sshra.s32 %s168_s8, 4  ;;  %s723_s11 = int_to_ptr.hbm [resolvable:$true] %s722_s11 }
   0xf   : > { %s724_s12 = scalar_lea.hbm %s723_s11, 512  ;;  %p726_p10 = pneg %p870_p8 }
  0x10   : > { %p725_p9 = scmp.ne.s32.totalorder %s723_s11, %s724_s12  ;;  %s729_s15 = scalar_lea.hbm %s1020_s2, 1024 }
  0x11   : > { %p730_p13 = scmp.lt.s32.totalorder %s723_s11, %s1020_s2  ;;  %p731_p0 = scmp.lt.s32.totalorder %s729_s15, %s724_s12 }
  0x12   : > { %p727_p11 = pnand %p726_p10, %p725_p9 }
  0x13   : > { %p732_p1 = por %p731_p0, %p730_p13 }
  0x14   : > { %p728_p12 = pneg %p727_p11 }
  0x16   : > { %p733_p2 = pnand %p732_p1, %p728_p12 }
  0x18   : > { %736 = shalt.err (!%p733_p2)
}
  0x19   : > { %s788_s24 = smov 512   ;;  %s789_s26 = smov 256  }
  0x1a   : > { %s790_s27 = smov 16   ;;  %p640_p3 = scmp.ge.s32.totalorder %s786_s18, 1 }
  0x1b   : > { %654 = dma.hbm_to_vmem [thread:$0]  (!%p870_p8), %s168_s8, 8192, %s170_s7, %s158_s10, %s788_s24, %s789_s26, %s790_s27  }
  0x1c   : > { %p177_p4 = scmp.lt.s32.totalorder %s786_s18, 3 }
  0x1e   : > { %p178_p5 = pnand %p640_p3, %p177_p4 }
  0x1f   : > { %s183_s28 = sand.u32 (!%p178_p5), 1, %s778_s16  }
  0x20   : > { %181 = sbr.rel (%p178_p5) target bundleno = 993 (0x3e1), region = 32  ;;  %s641_s29 = sshll.u32 (!%p178_p5), %s183_s28, 9 }
  0x21   : > { %s184_s30 = scalar_lea.sflag (!%p178_p5), [#allocation7], %s183_s28  ;;  %s887_s5 = scalar_lea.vmem (!%p178_p5), [#allocation6], %s641_s29 }
  0x25   : > { %769 = dma.done.wait (%p859_p7), %s184_s30, 8192  }
  0x26   : > { %771 = vsyncadd (%p859_p7), %s184_s30, 4294959104  ;;  %s642_s6 = sshll.u32 %s838_s19, 1  ;;  %p644_p8 = scmp.ne.s32.totalorder %s838_s19, 0 }
  0x27   : > { %p215_p6 = scmp.lt.s32.totalorder %s642_s6, 3 }
  0x28   : > { %223 = sbr.rel (%p644_p8) target bundleno = 317 (0x13d), region = 40 }
  0x29   : > { %s1031_s6 = smov (!%p215_p6, %s642_s6), 3 }
  0x2a   : > { %s643_s7 = sshll.u32 %s1031_s6, 3 }
  0x2b   : > { %s897_s9 = scalar_lea.vmem %s1021_s3, %s643_s7 }
  0x2d   : > { %v226_v0 = vld [vmem:[%s1019_s1] sm:$0xff]  ;;  %v909_v4 = vld [vmem:[%s1019_s1 + $0x8] sm:$0xff]  ;;  %vm298_vm0 = vcmask 7168   ;;  %v791_v12 = vmov 1.0  }
  0x2e   : > { %v224_v1 = vld [vmem:[%s1018_s0] sm:$0xff]  ;;  %v258_v2 = vmul.f32 %v226_v0, %v226_v0  ;;  %v914_v5 = vld [vmem:[%s1018_s0 + $0x8] sm:$0xff]  ;;  %v259_v6 = vmul.f32 %v909_v4, %v909_v4  ;;  %303 = vst.msk [vmem:[#allocation5] sm:$0xff] %vm298_vm0, %v791_v12 }
  0x2f   : > { %v228_v3 = vmul.f32 %v224_v1, %v224_v1  ;;  %v229_v7 = vmul.f32 %v914_v5, %v914_v5  ;;  %304 = vst.msk [vmem:[#allocation5 + $0x8] sm:$0xff] %vm298_vm0, %v791_v12 }
  0x30   : > { %260 = vadd.xlane.f32.xlu1 %v258_v2 }
  0x31   : > { %230 = vadd.xlane.f32.xlu0 %v228_v3 }
  0x38   : > { %262 = vadd.xlane.f32.xlu1 %v259_v6 }
  0x39   : > { %232 = vadd.xlane.f32.xlu0 %v229_v7 }
  0xa3   : > { %v261_v8 = vpop.xlane.xlu1 %260 }
  0xa4   : > { %v231_v9 = vpop.xlane.xlu0 %230  ;;  %v264_v10 = vmax.f32 %v261_v8, 1e-24 }
  0xa5   : > { %v234_v11 = vmax.f32 %v231_v9, 1e-24 }
  0xa6   : > { %694 = vrsqrt.f32 %v264_v10  ;;  %vm272_vm3 = vweird.f32 %v264_v10 }
  0xa7   : > { %696 = vrsqrt.f32 %v234_v11  ;;  %vm242_vm4 = vweird.f32 %v234_v11 }
  0xab   : > { %v263_v13 = vpop.xlane.xlu1 %262 }
  0xac   : > { %v233_v14 = vpop.xlane.xlu0 %232  ;;  %v695_v15 = vpop.eup %694  ;;  %v265_v16 = vmax.f32 %v263_v13, 1e-24 }
  0xad   : > { %v235_v17 = vmax.f32 %v233_v14, 1e-24  ;;  %v697_v18 = vpop.eup %696  ;;  %v267_v19 = vmul.f32 %v695_v15, %v264_v10  ;;  %vm273_vm1 = vweird.f32 %v695_v15 }
  0xae   : > { %v237_v20 = vmul.f32 %v697_v18, %v234_v11  ;;  %698 = vrsqrt.f32 %v265_v16  ;;  %vm243_vm2 = vweird.f32 %v697_v18  ;;  %vm274_vm5 = vmor %vm272_vm3, %vm273_vm1  ;;  %vm282_vm9 = vweird.f32 %v265_v16 }
  0xaf   : > { %v268_v21 = vmul.f32 %v695_v15, %v267_v19  ;;  %700 = vrsqrt.f32 %v235_v17  ;;  %vm244_vm6 = vmor %vm242_vm4, %vm243_vm2  ;;  %vm252_vm11 = vweird.f32 %v235_v17 }
  0xb0   : > { %v238_v22 = vmul.f32 %v697_v18, %v237_v20 }
  0xb1   : > { %v269_v23 = vmul.f32 0.5, %v268_v21 }
  0xb2   : > { %v239_v24 = vmul.f32 0.5, %v238_v22 }
  0xb3   : > { %v270_v25 = vsub.f32 1.5, %v269_v23 }
  0xb4   : > { %v699_v26 = vpop.eup %698  ;;  %v240_v27 = vsub.f32 1.5, %v239_v24 }
  0xb5   : > { %v701_v28 = vpop.eup %700  ;;  %v277_v29 = vmul.f32 %v699_v26, %v265_v16  ;;  %v271_v30 = vmul.f32 %v695_v15, %v270_v25  ;;  %vm283_vm7 = vweird.f32 %v699_v26 }
  0xb6   : > { %v247_v31 = vmul.f32 %v701_v28, %v235_v17  ;;  %v241_v32 = vmul.f32 %v697_v18, %v240_v27  ;;  %vm253_vm8 = vweird.f32 %v701_v28  ;;  %vm284_vm10 = vmor %vm282_vm9, %vm283_vm7 }
  0xb7   : > { %v278_v33 = vmul.f32 %v699_v26, %v277_v29  ;;  %v275_v34 = vsel %vm274_vm5, %v695_v15, %v271_v30  ;;  %vm254_vm12 = vmor %vm252_vm11, %vm253_vm8 }
  0xb8   : > { %v248_v35 = vmul.f32 %v701_v28, %v247_v31  ;;  %v245_v36 = vsel %vm244_vm6, %v697_v18, %v241_v32  ;;  %v286_v37 = vmul.f32 %v275_v34, %v226_v0 }
  0xb9   : > { %v279_v38 = vmul.f32 0.5, %v278_v33  ;;  %v256_v39 = vmul.f32 %v245_v36, %v224_v1 }
  0xba   : > { %v249_v40 = vmul.f32 0.5, %v248_v35 }
  0xbb   : > { %v280_v41 = vsub.f32 1.5, %v279_v38  ;;  %v288_v42 = vmul.f32 %v286_v37, %v256_v39  ;;  %296 = vst [vmem:[#allocation2] sm:$0xff] %v256_v39 }
  0xbc   : > { %v250_v43 = vsub.f32 1.5, %v249_v40 }
  0xbd   : > { %290 = vadd.xlane.f32.xlu2 %v288_v42  ;;  %v281_v44 = vmul.f32 %v699_v26, %v280_v41 }
  0xbe   : > { %v251_v45 = vmul.f32 %v701_v28, %v250_v43 }
  0xbf   : > { %v285_v46 = vsel %vm284_vm10, %v699_v26, %v281_v44 }
  0xc0   : > { %v255_v47 = vsel %vm254_vm12, %v701_v28, %v251_v45  ;;  %v287_v48 = vmul.f32 %v285_v46, %v909_v4 }
  0xc1   : > { %v257_v49 = vmul.f32 %v255_v47, %v914_v5 }
  0xc3   : > { %v289_v50 = vmul.f32 %v287_v48, %v257_v49  ;;  %297 = vst [vmem:[#allocation2 + $0x8] sm:$0xff] %v257_v49 }
  0xc5   : > { %292 = vadd.xlane.f32.xlu2 %v289_v50 }
 0x130   : > { %v291_v51 = vpop.xlane.xlu2 %290 }
 0x131   : > { %v294_v52 = vmul.f32 14.285714, %v291_v51 }
 0x133   : > { %299 = vst.msk [vmem:[#allocation3] sm:$0xff] %vm298_vm0, %v294_v52 }
 0x134   : > { %301 = vst.msk [vmem:[#allocation4] sm:$0xff] %vm298_vm0, %v294_v52 }
 0x138   : > { %v293_v53 = vpop.xlane.xlu2 %292 }
 0x139   : > { %v295_v54 = vmul.f32 14.285714, %v293_v53 }
 0x13b   : > { %300 = vst.msk [vmem:[#allocation3 + $0x8] sm:$0xff] %vm298_vm0, %v295_v54 }
 0x13c   : > { %302 = vst.msk [vmem:[#allocation4 + $0x8] sm:$0xff] %vm298_vm0, %v295_v54 }
 0x13d PF: > { %v337_v55 = vld [vmem:[%s887_s5 + $0xf0] sm:$0xff]  ;;  %v338_v56 = vld [vmem:[%s887_s5 + $0xf8] sm:$0xff]  ;;  %v335_v59 = vld [vmem:[%s887_s5 + $0xe0] sm:$0xff]  ;;  %vm509_vm13 = vcmask 7168   ;;  %p645_p7 = scmp.ne.s32.totalorder %s838_s19, 1 }
 0x13e   : > { %v369_v57 = vld [vmem:[%s887_s5 + $0x1f0] sm:$0xff]  ;;  %371 = vmatpush.msra.mxu0 %v337_v55  ;;  %391 = vmatpush.msra.mxu1 %v338_v56  ;;  %v370_v58 = vld [vmem:[%s887_s5 + $0x1f8] sm:$0xff]  ;;  %v336_v60 = vld [vmem:[%s887_s5 + $0xe8] sm:$0xff] }
 0x13f   : > { %411 = vmatpush.msra.mxu2 %v369_v57  ;;  %431 = vmatpush.msra.mxu3 %v370_v58  ;;  %v367_v61 = vld [vmem:[%s887_s5 + $0x1e0] sm:$0xff]  ;;  %v368_v62 = vld [vmem:[%s887_s5 + $0x1e8] sm:$0xff]  ;;  %v333_v63 = vld [vmem:[%s887_s5 + $0xd0] sm:$0xff] }
 0x140   : > { %372 = vmatpush.msra.mxu0 %v335_v59  ;;  %392 = vmatpush.msra.mxu1 %v336_v60  ;;  %v334_v0 = vld [vmem:[%s887_s5 + $0xd8] sm:$0xff]  ;;  %v365_v1 = vld [vmem:[%s887_s5 + $0x1d0] sm:$0xff]  ;;  %v331_v3 = vld [vmem:[%s887_s5 + $0xc0] sm:$0xff] }
 0x141   : > { %v366_v2 = vld [vmem:[%s887_s5 + $0x1d8] sm:$0xff]  ;;  %412 = vmatpush.msra.mxu2 %v367_v61  ;;  %432 = vmatpush.msra.mxu3 %v368_v62  ;;  %v332_v4 = vld [vmem:[%s887_s5 + $0xc8] sm:$0xff]  ;;  %v363_v5 = vld [vmem:[%s887_s5 + $0x1c0] sm:$0xff] }
 0x142   : > { %373 = vmatpush.msra.mxu0 %v333_v63  ;;  %393 = vmatpush.msra.mxu1 %v334_v0  ;;  %v364_v6 = vld [vmem:[%s887_s5 + $0x1c8] sm:$0xff]  ;;  %v329_v7 = vld [vmem:[%s887_s5 + $0xb0] sm:$0xff]  ;;  %v330_v8 = vld [vmem:[%s887_s5 + $0xb8] sm:$0xff] }
 0x143   : > { %413 = vmatpush.msra.mxu2 %v365_v1  ;;  %433 = vmatpush.msra.mxu3 %v366_v2  ;;  %v361_v9 = vld [vmem:[%s887_s5 + $0x1b0] sm:$0xff]  ;;  %v362_v10 = vld [vmem:[%s887_s5 + $0x1b8] sm:$0xff]  ;;  %v327_v11 = vld [vmem:[%s887_s5 + $0xa0] sm:$0xff] }
 0x144   : > { %374 = vmatpush.msra.mxu0 %v331_v3  ;;  %394 = vmatpush.msra.mxu1 %v332_v4  ;;  %v328_v12 = vld [vmem:[%s887_s5 + $0xa8] sm:$0xff]  ;;  %v359_v13 = vld [vmem:[%s887_s5 + $0x1a0] sm:$0xff]  ;;  %v325_v15 = vld [vmem:[%s887_s5 + $0x90] sm:$0xff] }
 0x145   : > { %414 = vmatpush.msra.mxu2 %v363_v5  ;;  %434 = vmatpush.msra.mxu3 %v364_v6  ;;  %v360_v14 = vld [vmem:[%s887_s5 + $0x1a8] sm:$0xff]  ;;  %v326_v16 = vld [vmem:[%s887_s5 + $0x98] sm:$0xff]  ;;  %v357_v17 = vld [vmem:[%s887_s5 + $0x190] sm:$0xff]  ;;  %v792_v5 = vmov 0  }
 0x146   : > { %375 = vmatpush.msra.mxu0 %v329_v7  ;;  %395 = vmatpush.msra.mxu1 %v330_v8  ;;  %v358_v18 = vld [vmem:[%s887_s5 + $0x198] sm:$0xff]  ;;  %v323_v19 = vld [vmem:[%s887_s5 + $0x80] sm:$0xff]  ;;  %v324_v20 = vld [vmem:[%s887_s5 + $0x88] sm:$0xff] }
 0x147   : > { %415 = vmatpush.msra.mxu2 %v361_v9  ;;  %435 = vmatpush.msra.mxu3 %v362_v10  ;;  %v355_v21 = vld [vmem:[%s887_s5 + $0x180] sm:$0xff]  ;;  %v356_v22 = vld [vmem:[%s887_s5 + $0x188] sm:$0xff]  ;;  %v321_v23 = vld [vmem:[%s887_s5 + $0x70] sm:$0xff] }
 0x148   : > { %376 = vmatpush.msra.mxu0 %v327_v11  ;;  %396 = vmatpush.msra.mxu1 %v328_v12  ;;  %v322_v24 = vld [vmem:[%s887_s5 + $0x78] sm:$0xff]  ;;  %v353_v25 = vld [vmem:[%s887_s5 + $0x170] sm:$0xff]  ;;  %v319_v27 = vld [vmem:[%s887_s5 + $0x60] sm:$0xff] }
 0x149   : > { %416 = vmatpush.msra.mxu2 %v359_v13  ;;  %436 = vmatpush.msra.mxu3 %v360_v14  ;;  %v354_v26 = vld [vmem:[%s887_s5 + $0x178] sm:$0xff]  ;;  %v320_v28 = vld [vmem:[%s887_s5 + $0x68] sm:$0xff]  ;;  %v351_v29 = vld [vmem:[%s887_s5 + $0x160] sm:$0xff] }
 0x14a   : > { %377 = vmatpush.msra.mxu0 %v325_v15  ;;  %397 = vmatpush.msra.mxu1 %v326_v16  ;;  %v352_v30 = vld [vmem:[%s887_s5 + $0x168] sm:$0xff]  ;;  %v317_v31 = vld [vmem:[%s887_s5 + $0x50] sm:$0xff]  ;;  %v318_v32 = vld [vmem:[%s887_s5 + $0x58] sm:$0xff] }
 0x14b   : > { %417 = vmatpush.msra.mxu2 %v357_v17  ;;  %437 = vmatpush.msra.mxu3 %v358_v18  ;;  %v349_v33 = vld [vmem:[%s887_s5 + $0x150] sm:$0xff]  ;;  %v350_v34 = vld [vmem:[%s887_s5 + $0x158] sm:$0xff]  ;;  %v315_v35 = vld [vmem:[%s887_s5 + $0x40] sm:$0xff] }
 0x14c   : > { %378 = vmatpush.msra.mxu0 %v323_v19  ;;  %398 = vmatpush.msra.mxu1 %v324_v20  ;;  %v316_v36 = vld [vmem:[%s887_s5 + $0x48] sm:$0xff]  ;;  %v347_v37 = vld [vmem:[%s887_s5 + $0x140] sm:$0xff]  ;;  %v313_v39 = vld [vmem:[%s887_s5 + $0x30] sm:$0xff] }
 0x14d   : > { %418 = vmatpush.msra.mxu2 %v355_v21  ;;  %438 = vmatpush.msra.mxu3 %v356_v22  ;;  %v348_v38 = vld [vmem:[%s887_s5 + $0x148] sm:$0xff]  ;;  %v314_v40 = vld [vmem:[%s887_s5 + $0x38] sm:$0xff]  ;;  %v345_v41 = vld [vmem:[%s887_s5 + $0x130] sm:$0xff] }
 0x14e   : > { %379 = vmatpush.msra.mxu0 %v321_v23  ;;  %399 = vmatpush.msra.mxu1 %v322_v24  ;;  %v346_v42 = vld [vmem:[%s887_s5 + $0x138] sm:$0xff]  ;;  %v311_v43 = vld [vmem:[%s887_s5 + $0x20] sm:$0xff]  ;;  %v312_v44 = vld [vmem:[%s887_s5 + $0x28] sm:$0xff] }
 0x14f   : > { %419 = vmatpush.msra.mxu2 %v353_v25  ;;  %439 = vmatpush.msra.mxu3 %v354_v26  ;;  %v343_v45 = vld [vmem:[%s887_s5 + $0x120] sm:$0xff]  ;;  %v344_v46 = vld [vmem:[%s887_s5 + $0x128] sm:$0xff]  ;;  %v309_v47 = vld [vmem:[%s887_s5 + $0x10] sm:$0xff] }
 0x150   : > { %380 = vmatpush.msra.mxu0 %v319_v27  ;;  %400 = vmatpush.msra.mxu1 %v320_v28  ;;  %v310_v48 = vld [vmem:[%s887_s5 + $0x18] sm:$0xff]  ;;  %v341_v49 = vld [vmem:[%s887_s5 + $0x110] sm:$0xff]  ;;  %v307_v51 = vld [vmem:[%s887_s5] sm:$0xff] }
 0x151   : > { %420 = vmatpush.msra.mxu2 %v351_v29  ;;  %440 = vmatpush.msra.mxu3 %v352_v30  ;;  %v342_v50 = vld [vmem:[%s887_s5 + $0x118] sm:$0xff]  ;;  %v308_v52 = vld [vmem:[%s887_s5 + $0x8] sm:$0xff]  ;;  %v339_v53 = vld [vmem:[%s887_s5 + $0x100] sm:$0xff] }
 0x152   : > { %381 = vmatpush.msra.mxu0 %v317_v31  ;;  %401 = vmatpush.msra.mxu1 %v318_v32  ;;  %v340_v54 = vld [vmem:[%s887_s5 + $0x108] sm:$0xff]  ;;  %v305_v55 = vld [vmem:[#allocation2] sm:$0xff] }
 0x153   : > { %421 = vmatpush.msra.mxu2 %v349_v33  ;;  %441 = vmatpush.msra.mxu3 %v350_v34  ;;  %v306_v56 = vld [vmem:[#allocation2 + $0x8] sm:$0xff]  ;;  %v459_v6 = vld [vmem:[#allocation4] sm:$0xff]  ;;  %v469_v33 = vld [vmem:[#allocation5] sm:$0xff] }
 0x154   : > { %382 = vmatpush.msra.mxu0 %v315_v35  ;;  %402 = vmatpush.msra.mxu1 %v316_v36  ;;  %v460_v10 = vld [vmem:[#allocation4 + $0x8] sm:$0xff] }
 0x155   : > { %422 = vmatpush.msra.mxu2 %v347_v37  ;;  %442 = vmatpush.msra.mxu3 %v348_v38  ;;  %v470_v38 = vld [vmem:[#allocation5 + $0x8] sm:$0xff] }
 0x156   : > { %383 = vmatpush.msra.mxu0 %v313_v39  ;;  %403 = vmatpush.msra.mxu1 %v314_v40 }
 0x157   : > { %423 = vmatpush.msra.mxu2 %v345_v41  ;;  %443 = vmatpush.msra.mxu3 %v346_v42 }
 0x158   : > { %384 = vmatpush.msra.mxu0 %v311_v43  ;;  %404 = vmatpush.msra.mxu1 %v312_v44 }
 0x159   : > { %424 = vmatpush.msra.mxu2 %v343_v45  ;;  %444 = vmatpush.msra.mxu3 %v344_v46 }
 0x15a   : > { %385 = vmatpush.msra.mxu0 %v309_v47  ;;  %405 = vmatpush.msra.mxu1 %v310_v48 }
 0x15b   : > { %425 = vmatpush.msra.mxu2 %v341_v49  ;;  %445 = vmatpush.msra.mxu3 %v342_v50 }
 0x15c   : > { %386 = vmatpush.msra.mxu0 %v307_v51  ;;  %406 = vmatpush.msra.mxu1 %v308_v52 }
 0x15d   : > { %426 = vmatpush.msra.mxu2 %v339_v53  ;;  %446 = vmatpush.msra.mxu3 %v340_v54 }
 0x15e   : > { %387 = vmatmul.f32.vlgmr.msra.gmra.mxu0 %v305_v55  ;;  %407 = vmatmul.f32.vlgmr.msra.gmra.mxu1 %v305_v55 }
 0x15f   : > { %427 = vmatmul.f32.vlgmr.msra.gmra.mxu2 %v306_v56  ;;  %447 = vmatmul.f32.vlgmr.msra.gmra.mxu3 %v306_v56 }
 0x160   : > { %702 = vset.pattern.permute.xlu1 %v792_v5  ;;  %703 = vset.pattern.permute.xlu0 %v792_v5 }
 0x1db   : > { %v388_v57 = vpop.f32.mrf.mxu0  ;;  %v408_v58 = vpop.f32.mrf.mxu1 }
 0x1dc   : > { %v451_v59 = vmul.f32 14.285714, %v388_v57  ;;  %v452_v60 = vmul.f32 14.285714, %v408_v58 }
 0x1de   : > { %v461_v61 = vmax.f32 %v451_v59, %v452_v60 }
 0x1e0   : > { %462 = vmax.xlane.f32.xlu0 %v461_v61 }
 0x1e2   : > { %v428_v62 = vpop.f32.mrf.mxu2  ;;  %v448_v63 = vpop.f32.mrf.mxu3 }
 0x1e3   : > { %v453_v0 = vmul.f32 14.285714, %v428_v62  ;;  %v454_v1 = vmul.f32 14.285714, %v448_v63 }
 0x1e5   : > { %v455_v2 = vadd.f32 %v453_v0, %v451_v59  ;;  %v456_v3 = vadd.f32 %v454_v1, %v452_v60  ;;  %v464_v4 = vmax.f32 %v453_v0, %v454_v1 }
 0x1e7   : > { %457 = vst [vmem:[%s897_s9] sm:$0xff] %v455_v2 }
 0x1e8   : > { %458 = vst [vmem:[%s897_s9 + $0x8] sm:$0xff] %v456_v3  ;;  %465 = vmax.xlane.f32.xlu0 %v464_v4 }
 0x253   : > { %v463_v7 = vpop.xlane.xlu0 %462 }
 0x254   : > { %v467_v8 = vmax.f32 %v459_v6, %v463_v7 }
 0x256   : > { %v471_v9 = vsub.f32 %v459_v6, %v467_v8  ;;  %512 = vst.msk [vmem:[#allocation4] sm:$0xff] %vm509_vm13, %v467_v8  ;;  %481 = vperm.xlu1 %702, %v467_v8  }
 0x258   : > { %v473_v30 = vmul.f32 1.442695, %v471_v9 }
 0x25b   : > { %v466_v11 = vpop.xlane.xlu0 %465 }
 0x25c   : > { %v468_v12 = vmax.f32 %v460_v10, %v466_v11 }
 0x25e   : > { %v472_v13 = vsub.f32 %v460_v10, %v468_v12  ;;  %513 = vst.msk [vmem:[#allocation4 + $0x8] sm:$0xff] %vm509_vm13, %v468_v12  ;;  %486 = vperm.xlu1 %702, %v468_v12  }
 0x260   : > { %v475_v31 = vmul.f32 1.442695, %v472_v13 }
 0x2c8   : > { %v482_v14 = vpop.permute.xlu1 %481 }
 0x2c9   : > { %v489_v15 = vsub.f32 %v451_v59, %v482_v14  ;;  %v490_v16 = vsub.f32 %v452_v60, %v482_v14 }
 0x2cb   : > { %v493_v17 = vmul.f32 1.442695, %v489_v15  ;;  %v495_v18 = vmul.f32 1.442695, %v490_v16 }
 0x2cd   : > { %704 = vpow2.f32 %v493_v17 }
 0x2ce   : > { %706 = vpow2.f32 %v495_v18 }
 0x2d0   : > { %v487_v19 = vpop.permute.xlu1 %486 }
 0x2d1   : > { %v491_v20 = vsub.f32 %v453_v0, %v487_v19  ;;  %v492_v21 = vsub.f32 %v454_v1, %v487_v19 }
 0x2d3   : > { %v705_v22 = vpop.eup %704  ;;  %v497_v23 = vmul.f32 1.442695, %v491_v20  ;;  %v499_v24 = vmul.f32 1.442695, %v492_v21 }
 0x2d4   : > { %v707_v25 = vpop.eup %706 }
 0x2d5   : > { %708 = vpow2.f32 %v497_v23  ;;  %v501_v26 = vadd.f32 %v707_v25, %v705_v22 }
 0x2d6   : > { %710 = vpow2.f32 %v499_v24 }
 0x2d7   : > { %502 = vadd.xlane.f32.xlu2 %v501_v26  ;;  %712 = vpow2.f32 %v473_v30 }
 0x2d8   : > { %714 = vpow2.f32 %v475_v31 }
 0x2db   : > { %v709_v27 = vpop.eup %708 }
 0x2dc   : > { %v711_v28 = vpop.eup %710 }
 0x2dd   : > { %v504_v29 = vadd.f32 %v711_v28, %v709_v27  ;;  %v713_v32 = vpop.eup %712 }
 0x2de   : > { %v477_v34 = vmul.f32 %v713_v32, %v469_v33  ;;  %v715_v37 = vpop.eup %714 }
 0x2df   : > { %505 = vadd.xlane.f32.xlu2 %v504_v29  ;;  %v478_v39 = vmul.f32 %v715_v37, %v470_v38 }
 0x34a   : > { %v503_v35 = vpop.xlane.xlu2 %502 }
 0x34b   : > { %v507_v36 = vadd.f32 %v503_v35, %v477_v34 }
 0x34d   : > { %510 = vst.msk [vmem:[#allocation5] sm:$0xff] %vm509_vm13, %v507_v36 }
 0x351   : > { %517 = sbr.rel (%p645_p7) target bundleno = 993 (0x3e1), region = 44 }
 0x352   : > { %v506_v40 = vpop.xlane.xlu2 %505 }
 0x353   : > { %v508_v41 = vadd.f32 %v506_v40, %v478_v39 }
 0x355   : > { %511 = vst.msk [vmem:[#allocation5 + $0x8] sm:$0xff] %vm509_vm13, %v508_v41 }
 0x356   : > { %v531_v42 = vld [vmem:[#allocation3] sm:$0xff]  ;;  %v793_v44 = vmov 0   ;;  %v518_v47 = vld [vmem:[#allocation4] sm:$0xff]  ;;  %v532_v48 = vld [vmem:[#allocation3 + $0x8] sm:$0xff]  ;;  %v528_v55 = vlaneseq }
 0x357   : > { %v520_v43 = vld [vmem:[#allocation5] sm:$0xff]  ;;  %717 = vset.pattern.permute.xlu1 %v793_v44  ;;  %716 = vset.pattern.permute.xlu0 %v793_v44  ;;  %v519_v53 = vld [vmem:[#allocation4 + $0x8] sm:$0xff] }
 0x358   : > { %718 = vlog2.f32 %v520_v43  ;;  %548 = vperm.xlu1 %717, %v531_v42   ;;  %v529_v56 = vand.u32 127, %v528_v55 }
 0x35a   : > { %vm533_vm14 = vcmp.eq.s32.totalorder %v529_v56, 1  ;;  %vm530_vm15 = vcmp.eq.s32.totalorder %v529_v56, 0 }
 0x35c   : > { %v521_v45 = vld [vmem:[#allocation5 + $0x8] sm:$0xff] }
 0x35d   : > { %720 = vlog2.f32 %v521_v45 }
 0x35e   : > { %v719_v46 = vpop.eup %718 }
 0x35f   : > { %v523_v49 = vmul.f32 0.6931472, %v719_v46 }
 0x360   : > { %553 = vperm.xlu1 %717, %v532_v48  }
 0x361   : > { %v526_v51 = vadd.f32 %v523_v49, %v518_v47 }
 0x363   : > { %v721_v50 = vpop.eup %720  ;;  %536 = vperm.xlu0 %716, %v526_v51  }
 0x364   : > { %v525_v52 = vmul.f32 0.6931472, %v721_v50 }
 0x366   : > { %v527_v54 = vadd.f32 %v525_v52, %v519_v53 }
 0x36b   : > { %541 = vperm.xlu0 %716, %v527_v54  }
 0x3ca   : > { %v549_v57 = vpop.permute.xlu1 %548 }
 0x3d2   : > { %v554_v62 = vpop.permute.xlu1 %553 }
 0x3d5   : > { %v537_v58 = vpop.permute.xlu0 %536 }
 0x3d6   : > { %v544_v59 = vsel %vm533_vm14, %v537_v58, 0.0 }
 0x3d7   : > { %v556_v60 = vsel %vm530_vm15, %v549_v57, %v544_v59 }
 0x3d8   : > { %558 = vst [vmem:[%s1022_s4] sm:$0xff] %v556_v60 }
 0x3dd   : > { %v542_v61 = vpop.permute.xlu0 %541 }
 0x3de   : > { %v545_v63 = vsel %vm533_vm14, %v542_v61, 0.0 }
 0x3df   : > { %v557_v0 = vsel %vm530_vm15, %v554_v62, %v545_v63 }
 0x3e0   : > { %559 = vst [vmem:[%s1022_s4 + $0x8] sm:$0xff] %v557_v0 }
 0x3e1 PF: > { %p15_p9 = scmp.ge.s32.totalorder %s841_s20, 4   ;;  %s1026_s15 = smov %s778_s16 }
 0x3e2   : > { %s1027_s16 = smov %s782_s17  ;;  %s1028_s17 = smov %s851_s23 }
 0x3e3   : > { %s1029_s18 = smov %s841_s20  ;;  %17 = sbr.rel (!%p15_p9) target bundleno = 3 (0x3), region = 88 }
 0x3e8   :  { %588 = vsyncpa [#allocation7], 1 }
 0x3e9   :  { %590 = vsyncpa [#allocation7 + $0x1], 1 }

</bundles_post_ra>
